<compile_context>
chip_gen: v7x
topology: tpu7x:2x2x1
jax: 0.10.0
libtpu: 0.0.40
codegen_flags: <defaults>
</compile_context>

<pallas_src>
import functools

import jax
import jax.numpy as jnp
import numpy as np
from jax import lax
from jax.experimental import pallas as pl
from jax.experimental.pallas import tpu as pltpu

# ----------------------------------------------------------------------------
# SuperNet config (only layer 0 is exercised here)
# ----------------------------------------------------------------------------
SuperNetSetting = [
    [4, 8, 12, 16], [4, 8, 12, 16], [4, 8, 12, 16], [4, 8, 12, 16],
    [4, 8, 12, 16], [4, 8, 12, 16], [4, 8, 12, 16],
    [4, 8, 12, 16, 20, 24, 28, 32], [4, 8, 12, 16, 20, 24, 28, 32],
    [4, 8, 12, 16, 20, 24, 28, 32], [4, 8, 12, 16, 20, 24, 28, 32],
    [4, 8, 12, 16, 20, 24, 28, 32], [4, 8, 12, 16, 20, 24, 28, 32],
    [4, 8, 12, 16, 20, 24, 28, 32, 36, 40, 44, 48, 52, 56, 60, 64],
    [4, 8, 12, 16, 20, 24, 28, 32, 36, 40, 44, 48, 52, 56, 60, 64],
    [4, 8, 12, 16, 20, 24, 28, 32, 36, 40, 44, 48, 52, 56, 60, 64],
    [4, 8, 12, 16, 20, 24, 28, 32, 36, 40, 44, 48, 52, 56, 60, 64],
    [4, 8, 12, 16, 20, 24, 28, 32, 36, 40, 44, 48, 52, 56, 60, 64],
    [4, 8, 12, 16, 20, 24, 28, 32, 36, 40, 44, 48, 52, 56, 60, 64],
    [4, 8, 12, 16, 20, 24, 28, 32, 36, 40, 44, 48, 52, 56, 60, 64],
]
TrackRunningStats = False
BN_EPS = 1e-5

# M-tile (lane) size.  512 lanes per step keeps the double-buffered VMEM
# footprint tiny (a few hundred KiB even on v7x's 64 MiB VMEM) while hitting
# a good fraction of the HBM roofline; per-step overhead (~0.35us) is well
# amortized at this layer's sizes.
_MAX_TILE_M = 512
_HIGH = jax.lax.Precision.HIGHEST


def _round_up(x, m):
    return (x + m - 1) // m * m


# ----------------------------------------------------------------------------
# Pallas kernels
# ----------------------------------------------------------------------------
def _gram_kernel(p_ref, g_ref):
    """Accumulate G_aug += P_tile @ P_tile^T over the M grid axis.

    p_ref: (Ka_pad, tile_m) ones-augmented patch tile (M on lanes -> the BN
    reductions become MXU contractions over the lane axis, not sublane VPU
    reductions).  g_ref: (Ka_pad, Ka_pad) f32 accumulator, resident in VMEM
    across the whole "arbitrary" grid axis.
    """
    @pl.when(pl.program_id(0) == 0)
    def _():
        g_ref[...] = jnp.zeros_like(g_ref)

    p = p_ref[...]
    g_ref[...] += lax.dot_general(
        p, p, dimension_numbers=(((1,), (1,)), ((), ())),
        preferred_element_type=jnp.float32, precision=_HIGH)


def _apply_kernel(a_ref, p_ref, o_ref):
    """out_T tile (Cout, tile_m) = A_aug^T (Cout, Ka_pad) @ P_aug tile (Ka_pad, tile_m).

    Output last dim = tile_m (multiple of 128) -> lane-dense unmasked stores.
    """
    o_ref[...] = jnp.dot(a_ref[...], p_ref[...],
                         preferred_element_type=jnp.float32,
                         precision=_HIGH)


# ----------------------------------------------------------------------------
# Glue: im2col (transposed + ones-augmented + padded)
# ----------------------------------------------------------------------------
def _im2col_t_aug(x_nchw, kh, kw, stride, padding, m_pad, ka_pad):
    """Return ones-augmented transposed patches, shape (ka_pad, m_pad).

    Row index k = (i*kw + j)*Cin + cin, the ones-row sits at k = Cin*kh*kw,
    any further rows are zero padding (sublane alignment).  Column index
    m = (n*Ho + h)*Wo + w; columns beyond the true M are all-zero (including
    the ones-row), so they contribute nothing to the Gram statistics and
    produce zeros in pass 2 that are simply sliced off.

    TODO(synk): this still materializes the kh*kw-amplified patch matrix in
    HBM; building patches in-kernel from a padded NHWC tile (shifted
    accumulating matmuls with halo handling) would remove that traffic.
    """
    n, c, h, w = x_nchw.shape
    xp = jnp.pad(x_nchw, ((0, 0), (0, 0), (padding, padding), (padding, padding)))
    ho = (h + 2 * padding - kh) // stride + 1
    wo = (w + 2 * padding - kw) // stride + 1
    cols = []
    for i in range(kh):
        for j in range(kw):
            cols.append(xp[:, :, i:i + ho * stride:stride, j:j + wo * stride:stride])
    p = jnp.stack(cols, axis=0)                 # (kh*kw, N, Cin, Ho, Wo)
    p = jnp.transpose(p, (0, 2, 1, 3, 4))       # (kh*kw, Cin, N, Ho, Wo)
    m_true = n * ho * wo
    k_dim = kh * kw * c
    p = p.reshape(k_dim, m_true)                # (K, M)  -- M on lanes
    p_aug = jnp.concatenate([p, jnp.ones((1, m_true), jnp.float32)], axis=0)
    p_aug = jnp.pad(p_aug, ((0, ka_pad - (k_dim + 1)), (0, m_pad - m_true)))
    return p_aug


# ----------------------------------------------------------------------------
# Module
# ----------------------------------------------------------------------------
class SampleSepProjectConvBNPallas:
    """JAX/Pallas port of SampleSepProjectConvBN (forward only)."""

    def __init__(self, layer_id, in_planes, out_planes, kernel_size, stride,
                 padding, bias, affine=False, seed=0):
        assert out_planes == SuperNetSetting[layer_id][-1]
        assert not affine, "affine BN not supported (module default is affine=False)"
        self.layer_id = layer_id
        self.in_planes = in_planes
        self.out_planes = out_planes
        self.kernel_size = kernel_size
        self.stride = stride
        self.padding = padding
        self.options = tuple(SuperNetSetting[layer_id])

        key = jax.random.PRNGKey(seed)
        fan_in = in_planes * kernel_size * kernel_size
        bound = 1.0 / np.sqrt(fan_in)
        self.conv_weights = []   # (c_i, Cin, kh, kw)
        self.conv_biases = []    # (c_i,) or None  (mathematically inert, see below)
        self.proj_weights = []   # (out_planes, c_i)  -- 1x1 projection conv
        self.wmats = []          # (K, c_i) conv-as-matmul weights
        for ch in self.options:
            key, kw_, kb_, kp_ = jax.random.split(key, 4)
            w = jax.random.uniform(kw_, (ch, in_planes, kernel_size, kernel_size),
                                   minval=-bound, maxval=bound, dtype=jnp.float32)
            self.conv_weights.append(w)
            if bias:
                # Conv bias shifts y and its batch mean identically, so it cancels
                # exactly in BN1 (track_running_stats=False); kept only so the
                # reference can demonstrate the cancellation.
                b = jax.random.uniform(kb_, (ch,), minval=-bound, maxval=bound,
                                       dtype=jnp.float32)
            else:
                b = None
            self.conv_biases.append(b)
            pb = 1.0 / np.sqrt(ch)
            pw = jax.random.uniform(kp_, (out_planes, ch),
                                    minval=-pb, maxval=pb, dtype=jnp.float32)
            self.proj_weights.append(pw)
            # K index ordering = (i*kw + j)*Cin + cin  (matches _im2col_t_aug)
            self.wmats.append(jnp.transpose(w, (2, 3, 1, 0)).reshape(
                kernel_size * kernel_size * in_planes, ch))

    # ------------------------------------------------------------------ #
    @functools.partial(jax.jit, static_argnums=(0,))
    def _forward(self, x_nchw, weight):
        n, c, h, w = x_nchw.shape
        assert c == self.in_planes
        weight = weight.astype(jnp.float32)
        kh = kw_sz = self.kernel_size
        ho = (h + 2 * self.padding - kh) // self.stride + 1
        wo = (w + 2 * self.padding - kw_sz) // self.stride + 1
        m_true = n * ho * wo
        k_dim = self.in_planes * kh * kw_sz
        ka = k_dim + 1
        ka_pad = _round_up(ka, 8)            # sublane-dense rows (zero padding)
        cout = self.out_planes

        # --- M tiling (lane axis), padded with harmless zero columns.
        tile_m = min(_MAX_TILE_M, _round_up(m_true, 128))
        m_pad = _round_up(m_true, tile_m)
        grid_m = m_pad // tile_m

        patches_aug = _im2col_t_aug(x_nchw, kh, kw_sz, self.stride,
                                    self.padding, m_pad, ka_pad)   # (ka_pad, m_pad)

        # ------------------------------------------------------------------
        # Pass 1: augmented Gram matrix of the patches (all BN statistics for
        # every branch come from this single accumulator).
        # ------------------------------------------------------------------
        g_aug = pl.pallas_call(
            _gram_kernel,
            out_shape=jax.ShapeDtypeStruct((ka_pad, ka_pad), jnp.float32),
            grid_spec=pltpu.PrefetchScalarGridSpec(
                num_scalar_prefetch=0,
                grid=(grid_m,),
                in_specs=[pl.BlockSpec((ka_pad, tile_m), lambda t: (0, t))],
                out_specs=pl.BlockSpec((ka_pad, ka_pad), lambda t: (0, 0)),
            ),
            compiler_params=pltpu.CompilerParams(
                dimension_semantics=("arbitrary",),
                vmem_limit_bytes=32 * 1024 * 1024,
            ),
        )(patches_aug)

        # ------------------------------------------------------------------
        # Tiny per-branch statistics algebra (plain XLA; matrices <= 64x64).
        # Folds conv weights, BN1 scale/shift, 1x1 projection, BN2 scale and
        # the architecture weight w_i into one affine map  out = A^T P + b.
        # ------------------------------------------------------------------
        gram = g_aug[:k_dim, :k_dim]          # sum_m p p^T
        s_vec = g_aug[k_dim, :k_dim]          # sum_m p
        inv_m = jnp.float32(1.0 / float(m_true))

        a_mat = jnp.zeros((k_dim, cout), jnp.float32)
        b_vec = jnp.zeros((cout,), jnp.float32)
        for i, _ch in enumerate(self.options):
            wmat = self.wmats[i]              # (K, c_i)
            wproj = self.proj_weights[i]      # (cout, c_i)
            mu = jnp.matmul(wmat.T, s_vec, precision=_HIGH) * inv_m        # (c,)
            eyy = jnp.matmul(jnp.matmul(wmat.T, gram * inv_m, precision=_HIGH),
                             wmat, precision=_HIGH)                        # (c, c)
            # Single-pass variance E[y^2] - mu^2.  Numerically safe here because
            # HIGHEST-precision f32 Gram; revisit if activations get a huge mean.
            cov = eyy - jnp.outer(mu, mu)
            inv_std = lax.rsqrt(jnp.diag(cov) + BN_EPS)                    # BN1
            czz = cov * jnp.outer(inv_std, inv_std)                        # E[z z^T]
            var_p = jnp.einsum('oc,cd,od->o', wproj, czz, wproj,
                               precision=_HIGH)                            # BN2 var
            inv_std_p = lax.rsqrt(var_p + BN_EPS)
            a_i = jnp.matmul(wmat * inv_std[None, :],
                             wproj.T * inv_std_p[None, :], precision=_HIGH)
            b_i = -inv_std_p * jnp.matmul(wproj, inv_std * mu, precision=_HIGH)
            # Mirror the PyTorch `if w != 0:` branch skip (also guards 0*inf).
            w_i = weight[i]
            a_mat = a_mat + jnp.where(w_i == 0, 0.0, w_i * a_i)
            b_vec = b_vec + jnp.where(w_i == 0, 0.0, w_i * b_i)

        # Augment with the bias row, then zero-pad columns to ka_pad so pass 2
        # is a single dense matmul (padded patch rows are zero -> inert).
        a_aug_t = jnp.concatenate([a_mat, b_vec[None, :]], axis=0).T      # (cout, ka)
        a_aug_t = jnp.pad(a_aug_t, ((0, 0), (0, ka_pad - ka)))            # (cout, ka_pad)

        # ------------------------------------------------------------------
        # Pass 2: apply the fused affine map, lane-dense output (Cout, tile_m).
        # ------------------------------------------------------------------
        out_t = pl.pallas_call(
            _apply_kernel,
            out_shape=jax.ShapeDtypeStruct((cout, m_pad), jnp.float32),
            grid_spec=pltpu.PrefetchScalarGridSpec(
                num_scalar_prefetch=0,
                grid=(grid_m,),
                in_specs=[pl.BlockSpec((cout, ka_pad), lambda t: (0, 0)),
                          pl.BlockSpec((ka_pad, tile_m), lambda t: (0, t))],
                out_specs=pl.BlockSpec((cout, tile_m), lambda t: (0, t)),
            ),
            compiler_params=pltpu.CompilerParams(
                dimension_semantics=("parallel",),   # independent M tiles (megacore)
                vmem_limit_bytes=32 * 1024 * 1024,
            ),
        )(a_aug_t, patches_aug)

        out = out_t[:, :m_true].reshape(cout, n, ho, wo)
        # TODO(synk): this final transpose is one extra HBM pass in XLA; drop it
        # if the downstream consumer can take channel-major / NHWC layout.
        return jnp.transpose(out, (1, 0, 2, 3))      # NCHW

    # ------------------------------------------------------------------ #
    def __call__(self, x_nchw, weight, lenth=None):
        """x_nchw: (N, Cin, H, W) f32; weight: (n_options,) mixing weights."""
        n_opts = len(self.options)
        if lenth is not None:
            assert lenth in self.options
            idx = self.options.index(lenth)
            weight = jnp.zeros((n_opts,), jnp.float32).at[idx].set(1.0)
        weight = jnp.asarray(weight, jnp.float32)
        assert weight.shape == (n_opts,)
        return self._forward(x_nchw, weight)


# ----------------------------------------------------------------------------
# Pure-JAX reference (mirrors the PyTorch per-branch forward literally)
# ----------------------------------------------------------------------------
def _reference(module, x, weight, lenth=None):
    opts = module.options
    if lenth is not None:
        idx = opts.index(lenth)
        weight = jnp.zeros((len(opts),), jnp.float32).at[idx].set(1.0)
    weight = jnp.asarray(weight, jnp.float32)
    out = 0.0
    for i in range(len(opts)):
        conv = lax.conv_general_dilated(
            x, module.conv_weights[i],
            window_strides=(module.stride, module.stride),
            padding=[(module.padding, module.padding)] * 2,
            dimension_numbers=("NCHW", "OIHW", "NCHW"),
            precision=_HIGH)
        if module.conv_biases[i] is not None:
            conv = conv + module.conv_biases[i][None, :, None, None]
        mean = jnp.mean(conv, axis=(0, 2, 3), keepdims=True)
        var = jnp.mean((conv - mean) ** 2, axis=(0, 2, 3), keepdims=True)
        z = (conv - mean) * lax.rsqrt(var + BN_EPS)
        p = jnp.einsum('oc,nchw->nohw', module.proj_weights[i], z, precision=_HIGH)
        pm = jnp.mean(p, axis=(0, 2, 3), keepdims=True)
        pv = jnp.mean((p - pm) ** 2, axis=(0, 2, 3), keepdims=True)
        q = (p - pm) * lax.rsqrt(pv + BN_EPS)
        out = out + weight[i] * q
    return out


# ----------------------------------------------------------------------------
if __name__ == "__main__":
    layer_id = 0
    in_planes = 4
    out_planes = SuperNetSetting[layer_id][-1]     # 16
    module = SampleSepProjectConvBNPallas(
        layer_id=layer_id, in_planes=in_planes, out_planes=out_planes,
        kernel_size=3, stride=1, padding=1, bias=False, affine=False, seed=0)

    key = jax.random.PRNGKey(0)
    kx, kw = jax.random.split(key)
    x = jax.random.normal(kx, (2, in_planes, 16, 16), dtype=jnp.float32)
    # architecture mixing weights over the 4 channel options
    weight = jax.nn.softmax(jax.random.normal(kw, (len(SuperNetSetting[layer_id]),)))

    # weighted multi-branch path
    out = jax.block_until_ready(module(x, weight))
    ref = _reference(module, x, weight)
    np.testing.assert_allclose(np.asarray(out), np.asarray(ref), rtol=2e-3, atol=2e-3)

    # single-branch (lenth) path
    out_l = jax.block_until_ready(module(x, weight, lenth=8))
    ref_l = _reference(module, x, weight, lenth=8)
    np.testing.assert_allclose(np.asarray(out_l), np.asarray(ref_l), rtol=2e-3, atol=2e-3)

    print("KERNEL_OK")
</pallas_src>

<mosaic_0001>
module attributes {stable_mosaic.version = 11 : i64} {
  func.func @_gram_kernel(%arg0: i32, %arg1: memref<40x512xf32, #tpu.memory_space<vmem>>, %arg2: memref<40x40xf32, #tpu.memory_space<vmem>>) attributes {dimension_semantics = [#tpu.dimension_semantics<arbitrary>], iteration_bounds = array<i64: 1>, scalar_prefetch = 0 : i64, scratch_operands = 0 : i64, tpu.core_type = #tpu.core_type<tc>, window_params = [{transform_indices = @transform_0, window_bounds = array<i64: 40, 512>}, {pipeline_mode = #tpu.pipeline_mode<synchronous>, transform_indices = @transform_1, window_bounds = array<i64: 40, 40>}]} {
    %c0_i32 = arith.constant 0 : i32
    %0 = arith.cmpi eq, %arg0, %c0_i32 : i32
    %1 = arith.extui %0 : i1 to i32
    %c0_i32_0 = arith.constant 0 : i32
    %2 = arith.cmpi ne, %1, %c0_i32_0 : i32
    scf.if %2 {
      %cst_6 = arith.constant 0.000000e+00 : f32
      %8 = vector.broadcast %cst_6 : f32 to vector<40x40xf32>
      %c0_7 = arith.constant 0 : index
      %c0_8 = arith.constant 0 : index
      %9 = vector.load %arg2[%c0_7, %c0_8] : memref<40x40xf32, #tpu.memory_space<vmem>>, vector<40x40xf32>
      tpu.vector_store %arg2[%c0_7, %c0_8], %8 {strides = array<i32>} : memref<40x40xf32, #tpu.memory_space<vmem>>, vector<40x40xf32>,
    } else {
    }
    %c0 = arith.constant 0 : index
    %c0_1 = arith.constant 0 : index
    %3 = vector.load %arg1[%c0, %c0_1] : memref<40x512xf32, #tpu.memory_space<vmem>>, vector<40x512xf32>
    %c0_2 = arith.constant 0 : index
    %c0_3 = arith.constant 0 : index
    %4 = vector.load %arg2[%c0_2, %c0_3] : memref<40x40xf32, #tpu.memory_space<vmem>>, vector<40x40xf32>
    %cst = arith.constant dense<0.000000e+00> : vector<40x40xf32>
    %5 = tpu.matmul %3, %3, %cst {dimension_numbers = #tpu.dot_dimension_numbers<[1], [1], [0], [0], [0, 0, 1, 0], [], []>, precision = #tpu.contract_precision<fp32>} : vector<40x512xf32>, vector<40x512xf32>, vector<40x40xf32> -> vector<40x40xf32>
    %6 = arith.addf %4, %5 : vector<40x40xf32>
    %c0_4 = arith.constant 0 : index
    %c0_5 = arith.constant 0 : index
    %7 = vector.load %arg2[%c0_4, %c0_5] : memref<40x40xf32, #tpu.memory_space<vmem>>, vector<40x40xf32>
    tpu.vector_store %arg2[%c0_4, %c0_5], %6 {strides = array<i32>} : memref<40x40xf32, #tpu.memory_space<vmem>>, vector<40x40xf32>,
    return
  }
  func.func @transform_0(%arg0: i32) -> (i32, i32) {
    %c0_i32 = arith.constant 0 : i32
    %c0_i32_0 = arith.constant 0 : i32
    return %c0_i32, %arg0 : i32, i32
  }
  func.func @transform_1(%arg0: i32) -> (i32, i32) {
    %c0_i32 = arith.constant 0 : i32
    %c0_i32_0 = arith.constant 0 : i32
    %c0_i32_1 = arith.constant 0 : i32
    return %c0_i32, %c0_i32_0 : i32, i32
  }
}

module attributes {stable_mosaic.version = 11 : i64} {
  func.func @_apply_kernel(%arg0: i32, %arg1: memref<16x40xf32, #tpu.memory_space<vmem>>, %arg2: memref<40x512xf32, #tpu.memory_space<vmem>>, %arg3: memref<16x512xf32, #tpu.memory_space<vmem>>) attributes {dimension_semantics = [#tpu.dimension_semantics<parallel>], iteration_bounds = array<i64: 1>, scalar_prefetch = 0 : i64, scratch_operands = 0 : i64, tpu.core_type = #tpu.core_type<tc>, window_params = [{pipeline_mode = #tpu.pipeline_mode<synchronous>, transform_indices = @transform_0, window_bounds = array<i64: 16, 40>}, {transform_indices = @transform_1, window_bounds = array<i64: 40, 512>}, {transform_indices = @transform_2, window_bounds = array<i64: 16, 512>}]} {
    %c0 = arith.constant 0 : index
    %c0_0 = arith.constant 0 : index
    %0 = vector.load %arg1[%c0, %c0_0] : memref<16x40xf32, #tpu.memory_space<vmem>>, vector<16x40xf32>
    %c0_1 = arith.constant 0 : index
    %c0_2 = arith.constant 0 : index
    %1 = vector.load %arg2[%c0_1, %c0_2] : memref<40x512xf32, #tpu.memory_space<vmem>>, vector<40x512xf32>
    %cst = arith.constant dense<0.000000e+00> : vector<16x512xf32>
    %2 = tpu.matmul %0, %1, %cst {dimension_numbers = #tpu.dot_dimension_numbers<[1], [0], [0], [1], [0, 0, 1, 1], [], []>, precision = #tpu.contract_precision<fp32>} : vector<16x40xf32>, vector<40x512xf32>, vector<16x512xf32> -> vector<16x512xf32>
    %c0_3 = arith.constant 0 : index
    %c0_4 = arith.constant 0 : index
    %3 = vector.load %arg3[%c0_3, %c0_4] : memref<16x512xf32, #tpu.memory_space<vmem>>, vector<16x512xf32>
    tpu.vector_store %arg3[%c0_3, %c0_4], %2 {strides = array<i32>} : memref<16x512xf32, #tpu.memory_space<vmem>>, vector<16x512xf32>,
    return
  }
  func.func @transform_0(%arg0: i32) -> (i32, i32) {
    %c0_i32 = arith.constant 0 : i32
    %c0_i32_0 = arith.constant 0 : i32
    %c0_i32_1 = arith.constant 0 : i32
    return %c0_i32, %c0_i32_0 : i32, i32
  }
  func.func @transform_1(%arg0: i32) -> (i32, i32) {
    %c0_i32 = arith.constant 0 : i32
    %c0_i32_0 = arith.constant 0 : i32
    return %c0_i32, %arg0 : i32, i32
  }
  func.func @transform_2(%arg0: i32) -> (i32, i32) {
    %c0_i32 = arith.constant 0 : i32
    %c0_i32_0 = arith.constant 0 : i32
    return %c0_i32, %arg0 : i32, i32
  }
}

</mosaic_0001>

<bundles_post_ra>
// kernel: _forward.2
= control target key start
LH: loop header
LB: loop body
LE: loop exit
PB: predicated region body
PF: predicated region fallthrough
CT: control target
= control target key end

     0   :  { %vm12_vm0 = vcmask 326656   ;;  %s2293_s0 = inlined_call_operand.vmem [shape: f32[40,512], index: 0, kind: input, shape index: {}]   ;;  %s2294_s1 = inlined_call_operand.vmem [shape: f32[40,40], index: 1, kind: output, shape index: {}]  }
   0x1   :  { %v19_v0 = vld [vmem:[%s2293_s0 + $0x8] sm:$0xff]  ;;  %v18_v2 = vld [vmem:[%s2293_s0] sm:$0xff] }
   0x2   :  { %v23_v1 = vld [vmem:[%s2293_s0 + $0x28] sm:$0xff]  ;;  %v1775_v3 = vand.u32 4294901760, %v19_v0  ;;  %v22_v5 = vld [vmem:[%s2293_s0 + $0x20] sm:$0xff]  ;;  %v1782_v6 = vand.u32 4294901760, %v18_v2 }
   0x3   :  { %v1777_v4 = vand.u32 4294901760, %v23_v1  ;;  %v27_v7 = vld [vmem:[%s2293_s0 + $0x48] sm:$0xff]  ;;  %v1790_v9 = vand.u32 4294901760, %v22_v5  ;;  %v26_v12 = vld [vmem:[%s2293_s0 + $0x40] sm:$0xff] }
   0x4   :  { %v31_v8 = vld [vmem:[%s2293_s0 + $0x68] sm:$0xff]  ;;  %v1792_v10 = vand.u32 4294901760, %v27_v7  ;;  %v30_v13 = vld [vmem:[%s2293_s0 + $0x60] sm:$0xff]  ;;  %v1807_v15 = vsub.f32 %v19_v0, %v1775_v3  ;;  %v1812_v17 = vand.u32 4294901760, %v26_v12  ;;  %308 = vmatprep.mubr.f32.mxu1 %v1775_v3  ;;  %v1829_v22 = vsub.f32 %v18_v2, %v1782_v6 }
   0x5   :  { %v1794_v11 = vand.u32 4294901760, %v31_v8  ;;  %v1804_v14 = vpack.c.bf16 %v1777_v4, %v1775_v3  ;;  %v1810_v16 = vsub.f32 %v23_v1, %v1777_v4  ;;  %v35_v18 = vld [vmem:[%s2293_s0 + $0x88] sm:$0xff]  ;;  %v1820_v19 = vpack.c.bf16 %v1790_v9, %v1782_v6  ;;  %v34_v37 = vld [vmem:[%s2293_s0 + $0x80] sm:$0xff] }
   0x6   :  { %v1826_v21 = vand.u32 4294901760, %v30_v13  ;;  %v1833_v23 = vand.u32 4294901760, %v1807_v15  ;;  %v1839_v25 = vsub.f32 %v22_v5, %v1790_v9  ;;  %v1843_v26 = vand.u32 4294901760, %v1829_v22 }
   0x7   :  { %v1824_v20 = vpack.c.bf16 %v1794_v11, %v1792_v10  ;;  %1659 = vmatprep.subr.bf16.mxu0 %v1804_v14  ;;  %v1836_v24 = vand.u32 4294901760, %v1810_v16  ;;  %v1845_v27 = vand.u32 4294901760, %v35_v18  ;;  %v1848_v28 = vsub.f32 %v27_v7, %v1792_v10 }
   0x8   :  { %1661 = vmatpush1.bf16.xpose.msra.mxu0 %v1820_v19  ;;  %v1851_v29 = vsub.f32 %v31_v8, %v1794_v11  ;;  %v120_v30 = vsub.f32 %v1807_v15, %v1833_v23  ;;  %v1860_v32 = vpack.c.bf16 %v1826_v21, %v1812_v17  ;;  %v1863_v33 = vand.u32 4294901760, %v1839_v25 }
   0x9   :  { %1663 = vmatprep.subr.bf16.mxu0 %v1824_v20  ;;  %v135_v31 = vsub.f32 %v1810_v16, %v1836_v24  ;;  %v126_v34 = vsub.f32 %v1829_v22, %v1843_v26  ;;  %v1868_v35 = vand.u32 4294901760, %v1848_v28  ;;  %v1877_v38 = vsub.f32 %v26_v12, %v1812_v17 }
   0xa   :  { %v1871_v36 = vand.u32 4294901760, %v1851_v29  ;;  %v121_v39 = vand.u32 4294901760, %v120_v30  ;;  %v141_v41 = vsub.f32 %v1839_v25, %v1863_v33  ;;  %v1882_v42 = vsub.f32 %v30_v13, %v1826_v21 }
   0xb   :  { %v136_v40 = vand.u32 4294901760, %v135_v31  ;;  %v127_v43 = vand.u32 4294901760, %v126_v34  ;;  %v150_v44 = vsub.f32 %v1848_v28, %v1868_v35  ;;  %v1889_v46 = vand.u32 4294901760, %v1877_v38  ;;  %v21_v34 = vld [vmem:[%s2293_s0 + $0x18] sm:$0xff] }
   0xc   :  { %v165_v45 = vsub.f32 %v1851_v29, %v1871_v36  ;;  %v142_v48 = vand.u32 4294901760, %v141_v41  ;;  %v1891_v49 = vand.u32 4294901760, %v34_v37  ;;  %v1894_v50 = vand.u32 4294901760, %v1882_v42  ;;  %122 = vmatprep.mubr.f32.mxu0 %v121_v39 }
   0xd   :  { %v1666_v47 = vpack.c.bf16 %v136_v40, %v121_v39  ;;  %v151_v51 = vand.u32 4294901760, %v150_v44  ;;  %v156_v53 = vsub.f32 %v1877_v38, %v1889_v46  ;;  %v1901_v56 = vsub.f32 %v35_v18, %v1845_v27  ;;  %v33_v44 = vld [vmem:[%s2293_s0 + $0x78] sm:$0xff] }
   0xe   :  { %v166_v52 = vand.u32 4294901760, %v165_v45  ;;  %v1668_v54 = vpack.c.bf16 %v142_v48, %v127_v43  ;;  %v171_v55 = vsub.f32 %v1882_v42, %v1894_v50  ;;  %v1909_v61 = vsub.f32 %v34_v37, %v1891_v49  ;;  %v25_v37 = vld [vmem:[%s2293_s0 + $0x38] sm:$0xff] }
   0xf   :  { %1667 = vmatprep.subr.bf16.mxu1 %v1666_v47  ;;  %v157_v58 = vand.u32 4294901760, %v156_v53  ;;  %v1906_v60 = vand.u32 4294901760, %v1901_v56  ;;  %v1674_v0 = vpack.c.bf16 %v1810_v16, %v1807_v15  ;;  %v1676_v5 = vpack.c.bf16 %v1839_v25, %v1829_v22 }
  0x10   :  { %1665 = vmatpush1.bf16.xpose.msra.mxu0 %v1860_v32  ;;  %v1670_v57 = vpack.c.bf16 %v166_v52, %v151_v51  ;;  %1669 = vmatpush1.bf16.xpose.msra.mxu1 %v1668_v54  ;;  %v172_v59 = vand.u32 4294901760, %v171_v55  ;;  %v1916_v1 = vand.u32 4294901760, %v1909_v61  ;;  %v1678_v8 = vpack.c.bf16 %v1851_v29, %v1848_v28 }
  0x11   :  { %60 = vmatprep.subr.mxu0 %v1845_v27  ;;  %v180_v62 = vsub.f32 %v1901_v56, %v1906_v60  ;;  %v1680_v13 = vpack.c.bf16 %v1882_v42, %v1877_v38  ;;  %v1690_v18 = vpack.c.bf16 %v1836_v24, %v1833_v23  ;;  %v1692_v30 = vpack.c.bf16 %v1863_v33, %v1843_v26 }
  0x12   :  { %1671 = vmatprep.subr.bf16.mxu1 %v1670_v57  ;;  %v1672_v63 = vpack.c.bf16 %v172_v59, %v157_v58  ;;  %v186_v7 = vsub.f32 %v1909_v61, %v1916_v1  ;;  %v1694_v31 = vpack.c.bf16 %v1871_v36, %v1868_v35  ;;  %v1962_v39 = vand.u32 4294901760, %v25_v37 }
  0x13   :  { %v181_v2 = vand.u32 4294901760, %v180_v62 }
  0x14   :  { %v187_v12 = vand.u32 4294901760, %v186_v7  ;;  %v1989_v45 = vsub.f32 %v25_v37, %v1962_v39 }
  0x18   :  { %62 = vmatpush1.xpose.msra.mxu0 %v1891_v49  ;;  %1673 = vmatpush1.bf16.xpose.msra.mxu1 %v1672_v63 }
  0x19   :  { %1675 = vmatprep.subr.bf16.mxu0 %v1674_v0  ;;  %246 = vmatprep.subr.mxu1 %v181_v2 }
  0x1b   :  { %128 = vmatmul.mubr.f32.vlgmr.msra.gmra.mrb[0].mxu0 %v127_v43  ;;  %v29_v43 = vld [vmem:[%s2293_s0 + $0x58] sm:$0xff] }
  0x1c   :  { %1677 = vmatpush1.bf16.xpose.msra.mxu0 %v1676_v5  ;;  %137 = vmatprep.mubr.f32.mxu0 %v136_v40  ;;  %v24_v40 = vld [vmem:[%s2293_s0 + $0x30] sm:$0xff]  ;;  %v1992_v47 = vand.u32 4294901760, %v29_v43 }
  0x1d   :  { %1679 = vmatprep.subr.bf16.mxu0 %v1678_v8 }
  0x1f   :  { %143 = vmatmul.mubr.f32.gmra.mrb[2].mxu0 %v142_v48  ;;  %v1994_v48 = vand.u32 4294901760, %v33_v44 }
  0x20   :  { %152 = vmatprep.mubr.f32.mxu0 %v151_v51  ;;  %252 = vmatpush1.xpose.msra.mxu1 %v187_v12  ;;  %v28_v51 = vld [vmem:[%s2293_s0 + $0x50] sm:$0xff] }
  0x21   :  { %1683 = vmatprep.subr.bf16.mxu1 %v1804_v14  ;;  %v2033_v53 = vand.u32 4294901760, %v28_v51  ;;  %v2080_v63 = vpack.c.bf16 %v1994_v48, %v1992_v47 }
  0x23   :  { %158 = vmatmul.mubr.f32.gmra.mrb[4].mxu0 %v157_v58  ;;  %310 = vmatmul.mubr.f32.vlgmr.msra.gmra.mrb[0].mxu1 %v1782_v6 }
  0x24   :  { %1681 = vmatpush1.bf16.xpose.msra.mxu0 %v1680_v13  ;;  %1685 = vmatpush1.bf16.xpose.msra.mxu1 %v1820_v19 }
  0x25   :  { %167 = vmatprep.mubr.f32.mxu0 %v166_v52  ;;  %315 = vmatprep.mubr.f32.mxu1 %v1777_v4 }
  0x26   :  { %369 = vmatprep.subr.mxu0 %v1901_v56  ;;  %1687 = vmatprep.subr.bf16.mxu1 %v1824_v20 }
  0x27   :  { %173 = vmatmul.mubr.f32.gmra.mrb[6].mxu0 %v172_v59  ;;  %317 = vmatmul.mubr.f32.gmra.mrb[2].mxu1 %v1790_v9  ;;  %v37_v59 = vld [vmem:[%s2293_s0 + $0x98] sm:$0xff] }
  0x28   :  { %182 = vmatprep.mubr.f32.mxu0 %v181_v2  ;;  %322 = vmatprep.mubr.f32.mxu1 %v1792_v10 }
  0x2b   :  { %188 = vmatmul.mubr.f32.gmra.mrb[8].mxu0 %v187_v12  ;;  %324 = vmatmul.mubr.f32.gmra.mrb[4].mxu1 %v1812_v17 }
  0x2c   :  { %372 = vmatpush1.xpose.msra.mxu0 %v1909_v61  ;;  %1689 = vmatpush1.bf16.xpose.msra.mxu1 %v1860_v32 }
  0x2d   :  { %329 = vmatprep.mubr.f32.mxu1 %v1794_v11  ;;  %429 = vmatprep.mubr.f32.mxu0 %v1807_v15  ;;  %v20_v15 = vld [vmem:[%s2293_s0 + $0x10] sm:$0xff] }
  0x2e   :  { %1691 = vmatprep.subr.bf16.mxu0 %v1690_v18  ;;  %490 = vmatprep.subr.mxu1 %v1845_v27  ;;  %v1972_v41 = vand.u32 4294901760, %v20_v15 }
  0x2f   :  { %432 = vmatmul.mubr.f32.vlgmr.msra.gmra.mrb[10].mxu0 %v1829_v22  ;;  %331 = vmatmul.mubr.f32.gmra.mrb[6].mxu1 %v1826_v21  ;;  %v1960_v22 = vand.u32 4294901760, %v21_v34 }
  0x30   :  { %1693 = vmatpush1.bf16.xpose.msra.mxu0 %v1692_v30  ;;  %336 = vmatprep.mubr.f32.mxu1 %v1845_v27 }
  0x31   :  { %438 = vmatprep.mubr.f32.mxu0 %v1810_v16  ;;  %1695 = vmatprep.subr.bf16.mxu0 %v1694_v31  ;;  %v1696_v16 = vpack.c.bf16 %v1894_v50, %v1889_v46  ;;  %v2042_v54 = vpack.c.bf16 %v1962_v39, %v1960_v22 }
  0x33   :  { %441 = vmatmul.mubr.f32.gmra.mrb[12].mxu0 %v1839_v25  ;;  %338 = vmatmul.mubr.f32.gmra.mrb[8].mxu1 %v1891_v49  ;;  %v1982_v25 = vand.u32 4294901760, %v24_v40 }
  0x34   :  { %447 = vmatprep.mubr.f32.mxu0 %v1848_v28  ;;  %492 = vmatpush1.xpose.msra.mxu1 %v1891_v49  ;;  %v1986_v28 = vsub.f32 %v21_v34, %v1960_v22 }
  0x35   :  { %550 = vmatprep.mubr.f32.mxu1 %v1833_v23  ;;  %1699 = vmatprep.subr.bf16.mxu1 %v1804_v14  ;;  %v1998_v23 = vsub.f32 %v20_v15, %v1972_v41  ;;  %v2003_v14 = vsub.f32 %v24_v40, %v1982_v25  ;;  %v2059_v57 = vpack.c.bf16 %v1982_v25, %v1972_v41 }
  0x37   :  { %450 = vmatmul.mubr.f32.gmra.mrb[14].mxu0 %v1877_v38  ;;  %554 = vmatmul.mubr.f32.vlgmr.msra.gmra.mrb[10].mxu1 %v1843_v26  ;;  %v2008_v38 = vand.u32 4294901760, %v1986_v28  ;;  %v2011_v26 = vand.u32 4294901760, %v1989_v45  ;;  %v2030_v52 = vand.u32 4294901760, %v1998_v23 }
  0x38   :  { %1697 = vmatpush1.bf16.xpose.msra.mxu0 %v1696_v16  ;;  %1701 = vmatpush1.bf16.xpose.msra.mxu1 %v1820_v19  ;;  %v32_v19 = vld [vmem:[%s2293_s0 + $0x70] sm:$0xff] }
  0x39   :  { %456 = vmatprep.mubr.f32.mxu0 %v1851_v29  ;;  %561 = vmatprep.mubr.f32.mxu1 %v1836_v24  ;;  %v2022_v24 = vsub.f32 %v29_v43, %v1992_v47  ;;  %v2025_v29 = vsub.f32 %v33_v44, %v1994_v48  ;;  %v935_v55 = vsub.f32 %v1989_v45, %v2011_v26 }
  0x3a   :  { %638 = vmatprep.subr.mxu0 %v1906_v60  ;;  %1703 = vmatprep.subr.bf16.mxu1 %v1824_v20  ;;  %v2038_v20 = vand.u32 4294901760, %v2003_v14  ;;  %v926_v58 = vsub.f32 %v1998_v23, %v2030_v52 }
  0x3b   :  { %459 = vmatmul.mubr.f32.gmra.mrb[16].mxu0 %v1882_v42  ;;  %565 = vmatmul.mubr.f32.gmra.mrb[12].mxu1 %v1863_v33  ;;  %v2035_v42 = vand.u32 4294901760, %v32_v19  ;;  %v920_v33 = vsub.f32 %v1986_v28, %v2008_v38  ;;  %v2082_v0 = vand.u32 4294901760, %v935_v55 }
  0x3c   :  { %465 = vmatprep.mubr.f32.mxu0 %v1901_v56  ;;  %572 = vmatprep.mubr.f32.mxu1 %v1868_v35  ;;  %v2050_v35 = vand.u32 4294901760, %v2022_v24  ;;  %v2053_v56 = vand.u32 4294901760, %v2025_v29  ;;  %v927_v7 = vand.u32 4294901760, %v926_v58  ;;  %v1726_v58 = vpack.c.bf16 %v2025_v29, %v2022_v24 }
  0x3d   :  { %v2074_v62 = vsub.f32 %v32_v19, %v2035_v42  ;;  %v2115_v34 = vpack.c.bf16 %v2035_v42, %v2033_v53 }
  0x3e   :  { %v950_v2 = vsub.f32 %v2022_v24, %v2050_v35  ;;  %v965_v5 = vsub.f32 %v2025_v29, %v2053_v56 }
  0x3f   :  { %468 = vmatmul.mubr.f32.gmra.mrb[18].mxu0 %v1909_v61  ;;  %576 = vmatmul.mubr.f32.gmra.mrb[14].mxu1 %v1889_v46  ;;  %v941_v46 = vsub.f32 %v2003_v14, %v2038_v20  ;;  %v2071_v61 = vsub.f32 %v28_v51, %v2033_v53  ;;  %v2100_v13 = vand.u32 4294901760, %v2074_v62 }
  0x40   :  { %642 = vmatpush1.xpose.msra.mxu0 %v1916_v1  ;;  %1705 = vmatpush1.bf16.xpose.msra.mxu1 %v1860_v32  ;;  %v921_v32 = vand.u32 4294901760, %v920_v33  ;;  %v966_v30 = vand.u32 4294901760, %v965_v5 }
  0x41   :  { %583 = vmatprep.mubr.f32.mxu1 %v1871_v36  ;;  %698 = vmatprep.mubr.f32.mxu0 %v1775_v3  ;;  %v2086_v36 = vand.u32 4294901760, %v37_v59  ;;  %v942_v8 = vand.u32 4294901760, %v941_v46  ;;  %v2097_v12 = vand.u32 4294901760, %v2071_v61  ;;  %v971_v16 = vsub.f32 %v2074_v62, %v2100_v13 }
  0x42   :  { %1707 = vmatprep.subr.bf16.mxu0 %v2042_v54  ;;  %750 = vmatprep.subr.mxu1 %v1845_v27  ;;  %v1714_v18 = vpack.c.bf16 %v2082_v0, %v921_v32 }
  0x43   :  { %700 = vmatmul.mubr.f32.vlgmr.msra.gmra.mrb[20].mxu0 %v1782_v6  ;;  %587 = vmatmul.mubr.f32.gmra.mrb[16].mxu1 %v1894_v50  ;;  %v36_v50 = vld [vmem:[%s2293_s0 + $0x90] sm:$0xff]  ;;  %v2109_v31 = vsub.f32 %v37_v59, %v2086_v36  ;;  %v1716_v37 = vpack.c.bf16 %v942_v8, %v927_v7  ;;  %v956_v40 = vsub.f32 %v2071_v61, %v2097_v12  ;;  %v972_v44 = vand.u32 4294901760, %v971_v16 }
  0x44   :  { %1709 = vmatpush1.bf16.xpose.msra.mxu0 %v2059_v57  ;;  %594 = vmatprep.mubr.f32.mxu1 %v1906_v60  ;;  %v951_v60 = vand.u32 4294901760, %v950_v2  ;;  %v2119_v15 = vand.u32 4294901760, %v36_v50 }
  0x45   :  { %705 = vmatprep.mubr.f32.mxu0 %v1777_v4  ;;  %1711 = vmatprep.subr.bf16.mxu0 %v2080_v63  ;;  %v2127_v43 = vand.u32 4294901760, %v2109_v31 }
  0x46   :  { %v2133_v51 = vsub.f32 %v36_v50, %v2119_v15 }
  0x47   :  { %707 = vmatmul.mubr.f32.gmra.mrb[22].mxu0 %v1790_v9  ;;  %598 = vmatmul.mubr.f32.gmra.mrb[18].mxu1 %v1916_v1  ;;  %v1718_v1 = vpack.c.bf16 %v966_v30, %v951_v60 }
  0x48   :  { %712 = vmatprep.mubr.f32.mxu0 %v1792_v10  ;;  %752 = vmatpush1.xpose.msra.mxu1 %v1891_v49  ;;  %v2144_v33 = vand.u32 4294901760, %v2133_v51 }
  0x49   :  { %808 = vmatprep.mubr.f32.mxu1 %v1775_v3  ;;  %1715 = vmatprep.subr.bf16.mxu1 %v1714_v18  ;;  %v957_v3 = vand.u32 4294901760, %v956_v40 }
  0x4b   :  { %714 = vmatmul.mubr.f32.gmra.mrb[24].mxu0 %v1812_v17  ;;  %810 = vmatmul.mubr.f32.vlgmr.msra.gmra.mrb[20].mxu1 %v1782_v6  ;;  %v980_v6 = vsub.f32 %v2109_v31, %v2127_v43  ;;  %v1720_v19 = vpack.c.bf16 %v972_v44, %v957_v3 }
  0x4c   :  { %1713 = vmatpush1.bf16.xpose.msra.mxu0 %v2115_v34  ;;  %1717 = vmatpush1.bf16.xpose.msra.mxu1 %v1716_v37 }
  0x4d   :  { %719 = vmatprep.mubr.f32.mxu0 %v1794_v11  ;;  %815 = vmatprep.mubr.f32.mxu1 %v1777_v4  ;;  %v1722_v4 = vpack.c.bf16 %v1989_v45, %v1986_v28  ;;  %v981_v55 = vand.u32 4294901760, %v980_v6 }
  0x4e   :  { %860 = vmatprep.subr.mxu0 %v2086_v36  ;;  %1719 = vmatprep.subr.bf16.mxu1 %v1718_v1 }
  0x4f   :  { %721 = vmatmul.mubr.f32.gmra.mrb[26].mxu0 %v1826_v21  ;;  %817 = vmatmul.mubr.f32.gmra.mrb[22].mxu1 %v1790_v9  ;;  %v1724_v9 = vpack.c.bf16 %v2003_v14, %v1998_v23 }
  0x50   :  { %726 = vmatprep.mubr.f32.mxu0 %v1845_v27  ;;  %822 = vmatprep.mubr.f32.mxu1 %v1792_v10  ;;  %v986_v10 = vsub.f32 %v2133_v51, %v2144_v33 }
  0x53   :  { %728 = vmatmul.mubr.f32.gmra.mrb[28].mxu0 %v1891_v49  ;;  %824 = vmatmul.mubr.f32.gmra.mrb[24].mxu1 %v1812_v17  ;;  %v987_v17 = vand.u32 4294901760, %v986_v10 }
  0x54   :  { %862 = vmatpush1.xpose.msra.mxu0 %v2119_v15  ;;  %1721 = vmatpush1.bf16.xpose.msra.mxu1 %v1720_v19 }
  0x55   :  { %829 = vmatprep.mubr.f32.mxu1 %v1794_v11  ;;  %922 = vmatprep.mubr.f32.mxu0 %v921_v32  ;;  %v1728_v11 = vpack.c.bf16 %v2074_v62, %v2071_v61 }
  0x56   :  { %1723 = vmatprep.subr.bf16.mxu0 %v1722_v4  ;;  %1046 = vmatprep.subr.mxu1 %v981_v55 }
  0x57   :  { %928 = vmatmul.mubr.f32.vlgmr.msra.gmra.mrb[30].mxu0 %v927_v7  ;;  %831 = vmatmul.mubr.f32.gmra.mrb[26].mxu1 %v1826_v21  ;;  %v1738_v21 = vpack.c.bf16 %v2011_v26, %v2008_v38 }
  0x58   :  { %1725 = vmatpush1.bf16.xpose.msra.mxu0 %v1724_v9  ;;  %836 = vmatprep.mubr.f32.mxu1 %v1845_v27  ;;  %v1740_v27 = vpack.c.bf16 %v2038_v20, %v2030_v52 }
  0x59   :  { %937 = vmatprep.mubr.f32.mxu0 %v2082_v0  ;;  %1727 = vmatprep.subr.bf16.mxu0 %v1726_v58 }
  0x5b   :  { %943 = vmatmul.mubr.f32.gmra.mrb[32].mxu0 %v942_v8  ;;  %838 = vmatmul.mubr.f32.gmra.mrb[28].mxu1 %v1891_v49  ;;  %v1742_v49 = vpack.c.bf16 %v2053_v56, %v2050_v35 }
  0x5c   :  { %952 = vmatprep.mubr.f32.mxu0 %v951_v60  ;;  %1052 = vmatpush1.xpose.msra.mxu1 %v987_v17 }
  0x5d   :  { %1108 = vmatprep.mubr.f32.mxu1 %v1960_v22  ;;  %1731 = vmatprep.subr.bf16.mxu1 %v2042_v54 }
  0x5f   :  { %958 = vmatmul.mubr.f32.gmra.mrb[34].mxu0 %v957_v3  ;;  %1110 = vmatmul.mubr.f32.vlgmr.msra.gmra.mrb[30].mxu1 %v1972_v41 }
  0x60   :  { %1729 = vmatpush1.bf16.xpose.msra.mxu0 %v1728_v11  ;;  %1733 = vmatpush1.bf16.xpose.msra.mxu1 %v2059_v57 }
  0x61   :  { %967 = vmatprep.mubr.f32.mxu0 %v966_v30  ;;  %1115 = vmatprep.mubr.f32.mxu1 %v1962_v39 }
  0x62   :  { %1169 = vmatprep.subr.mxu0 %v2109_v31  ;;  %1735 = vmatprep.subr.bf16.mxu1 %v2080_v63 }
  0x63   :  { %973 = vmatmul.mubr.f32.gmra.mrb[36].mxu0 %v972_v44  ;;  %1117 = vmatmul.mubr.f32.gmra.mrb[32].mxu1 %v1982_v25 }
  0x64   :  { %982 = vmatprep.mubr.f32.mxu0 %v981_v55  ;;  %1122 = vmatprep.mubr.f32.mxu1 %v1992_v47 }
  0x67   :  { %988 = vmatmul.mubr.f32.gmra.mrb[38].mxu0 %v987_v17  ;;  %1124 = vmatmul.mubr.f32.gmra.mrb[34].mxu1 %v2033_v53 }
  0x68   :  { %1172 = vmatpush1.xpose.msra.mxu0 %v2133_v51  ;;  %1737 = vmatpush1.bf16.xpose.msra.mxu1 %v2115_v34 }
  0x69   :  { %1129 = vmatprep.mubr.f32.mxu1 %v1994_v48  ;;  %1229 = vmatprep.mubr.f32.mxu0 %v1986_v28  ;;  %v1744_v28 = vpack.c.bf16 %v2100_v13, %v2097_v12 }
  0x6a   :  { %1739 = vmatprep.subr.bf16.mxu0 %v1738_v21  ;;  %1290 = vmatprep.subr.mxu1 %v2086_v36 }
  0x6b   :  { %1232 = vmatmul.mubr.f32.vlgmr.msra.gmra.mrb[40].mxu0 %v1998_v23  ;;  %1131 = vmatmul.mubr.f32.gmra.mrb[36].mxu1 %v2035_v42 }
  0x6c   :  { %1741 = vmatpush1.bf16.xpose.msra.mxu0 %v1740_v27  ;;  %1136 = vmatprep.mubr.f32.mxu1 %v2086_v36 }
  0x6d   :  { %1238 = vmatprep.mubr.f32.mxu0 %v1989_v45  ;;  %1743 = vmatprep.subr.bf16.mxu0 %v1742_v49 }
  0x6f   :  { %1241 = vmatmul.mubr.f32.gmra.mrb[42].mxu0 %v2003_v14  ;;  %1138 = vmatmul.mubr.f32.gmra.mrb[38].mxu1 %v2119_v15 }
  0x70   :  { %1247 = vmatprep.mubr.f32.mxu0 %v2022_v24  ;;  %1292 = vmatpush1.xpose.msra.mxu1 %v2119_v15 }
  0x71   :  { %1350 = vmatprep.mubr.f32.mxu1 %v2008_v38  ;;  %1747 = vmatprep.subr.bf16.mxu1 %v2042_v54 }
  0x73   :  { %1250 = vmatmul.mubr.f32.gmra.mrb[44].mxu0 %v2071_v61  ;;  %1354 = vmatmul.mubr.f32.vlgmr.msra.gmra.mrb[40].mxu1 %v2030_v52 }
  0x74   :  { %1745 = vmatpush1.bf16.xpose.msra.mxu0 %v1744_v28  ;;  %1749 = vmatpush1.bf16.xpose.msra.mxu1 %v2059_v57 }
  0x75   :  { %1256 = vmatprep.mubr.f32.mxu0 %v2025_v29  ;;  %1361 = vmatprep.mubr.f32.mxu1 %v2011_v26 }
  0x76   :  { %1438 = vmatprep.subr.mxu0 %v2127_v43  ;;  %1751 = vmatprep.subr.bf16.mxu1 %v2080_v63 }
  0x77   :  { %1259 = vmatmul.mubr.f32.gmra.mrb[46].mxu0 %v2074_v62  ;;  %1365 = vmatmul.mubr.f32.gmra.mrb[42].mxu1 %v2038_v20 }
  0x78   :  { %1265 = vmatprep.mubr.f32.mxu0 %v2109_v31  ;;  %1372 = vmatprep.mubr.f32.mxu1 %v2050_v35 }
  0x7b   :  { %1268 = vmatmul.mubr.f32.gmra.mrb[48].mxu0 %v2133_v51  ;;  %1376 = vmatmul.mubr.f32.gmra.mrb[44].mxu1 %v2097_v12 }
  0x7c   :  { %1442 = vmatpush1.xpose.msra.mxu0 %v2144_v33  ;;  %1753 = vmatpush1.bf16.xpose.msra.mxu1 %v2115_v34 }
  0x7d   :  { %1383 = vmatprep.mubr.f32.mxu1 %v2053_v56  ;;  %1498 = vmatprep.mubr.f32.mxu0 %v1960_v22 }
  0x7e   :  { %1550 = vmatprep.subr.mxu1 %v2086_v36 }
  0x7f   :  { %1500 = vmatmul.mubr.f32.vlgmr.msra.gmra.mrb[50].mxu0 %v1972_v41  ;;  %1387 = vmatmul.mubr.f32.gmra.mrb[46].mxu1 %v2100_v13 }
  0x80   :  { %1505 = vmatprep.mubr.f32.mxu0 %v1962_v39  ;;  %1394 = vmatprep.mubr.f32.mxu1 %v2127_v43 }
  0x83   :  { %1507 = vmatmul.mubr.f32.gmra.mrb[52].mxu0 %v1982_v25  ;;  %1398 = vmatmul.mubr.f32.gmra.mrb[48].mxu1 %v2144_v33 }
  0x84   :  { %1512 = vmatprep.mubr.f32.mxu0 %v1992_v47  ;;  %1552 = vmatpush1.xpose.msra.mxu1 %v2119_v15 }
  0x85   :  { %1608 = vmatprep.mubr.f32.mxu1 %v1960_v22  ;;  %v1755_v22 = vmov 0.0  }
  0x86   :  { %13 = vst.msk [vmem:[%s2294_s1] sm:$0xff] %vm12_vm0, %v1755_v22  ;;  %14 = vst.msk [vmem:[%s2294_s1 + $0x8] sm:$0xff] %vm12_vm0, %v1755_v22 }
  0x87   :  { %1514 = vmatmul.mubr.f32.gmra.mrb[54].mxu0 %v2033_v53  ;;  %1610 = vmatmul.mubr.f32.vlgmr.msra.gmra.mrb[50].mxu1 %v1972_v41  ;;  %15 = vst.msk [vmem:[%s2294_s1 + $0x10] sm:$0xff] %vm12_vm0, %v1755_v22  ;;  %16 = vst.msk [vmem:[%s2294_s1 + $0x18] sm:$0xff] %vm12_vm0, %v1755_v22 }
  0x88   :  { %1519 = vmatprep.mubr.f32.mxu0 %v1994_v48  ;;  %1615 = vmatprep.mubr.f32.mxu1 %v1962_v39  ;;  %17 = vst.msk [vmem:[%s2294_s1 + $0x20] sm:$0xff] %vm12_vm0, %v1755_v22 }
  0x8b   :  { %1521 = vmatmul.mubr.f32.gmra.mrb[56].mxu0 %v2035_v42  ;;  %1617 = vmatmul.mubr.f32.gmra.mrb[52].mxu1 %v1982_v25 }
  0x8c   :  { %1526 = vmatprep.mubr.f32.mxu0 %v2086_v36  ;;  %1622 = vmatprep.mubr.f32.mxu1 %v1992_v47 }
  0x8f   :  { %1528 = vmatmul.mubr.f32.gmra.mrb[58].mxu0 %v2119_v15  ;;  %1624 = vmatmul.mubr.f32.gmra.mrb[54].mxu1 %v2033_v53 }
  0x90   :  { %1629 = vmatprep.mubr.f32.mxu1 %v1994_v48 }
  0x93   :  { %1631 = vmatmul.mubr.f32.gmra.mrb[56].mxu1 %v2035_v42 }
  0x94   :  { %1636 = vmatprep.mubr.f32.mxu1 %v2086_v36 }
  0x97   :  { %1638 = vmatmul.mubr.f32.gmra.mrb[58].mxu1 %v2119_v15 }
  0xee   :  { %v129_v39 = vpop.f32.mrb[0].mxu0 }
  0xef   :  { %v131_v41 = vpop.f32.mrb[1].mxu0 }
  0xf2   :  { %v144_v25 = vpop.f32.mrb[2].mxu0 }
  0xf3   :  { %v146_v45 = vpop.f32.mrb[3].mxu0 }
  0xf6   :  { %v159_v47 = vpop.f32.mrb[4].mxu0  ;;  %v311_v48 = vpop.f32.mrb[0].mxu1 }
  0xf7   :  { %v161_v23 = vpop.f32.mrb[5].mxu0  ;;  %v312_v14 = vadd.f32 %v311_v48, %v129_v39  ;;  %v313_v38 = vpop.f32.mrb[1].mxu1 }
  0xfa   :  { %v174_v26 = vpop.f32.mrb[6].mxu0  ;;  %v318_v24 = vpop.f32.mrb[2].mxu1 }
  0xfb   :  { %v176_v29 = vpop.f32.mrb[7].mxu0  ;;  %v319_v52 = vadd.f32 %v318_v24, %v144_v25  ;;  %v320_v53 = vpop.f32.mrb[3].mxu1 }
  0xfe   :  { %v189_v42 = vpop.f32.mrb[8].mxu0  ;;  %v325_v20 = vpop.f32.mrb[4].mxu1 }
  0xff   :  { %v191_v54 = vpop.f32.mrb[9].mxu0  ;;  %v326_v35 = vadd.f32 %v325_v20, %v159_v47  ;;  %v327_v56 = vpop.f32.mrb[5].mxu1 }
 0x102   :  { %v433_v57 = vpop.f32.mrb[10].mxu0  ;;  %v332_v59 = vpop.f32.mrb[6].mxu1 }
 0x103   :  { %v434_v46 = vadd.f32 %v433_v57, %v312_v14  ;;  %v435_v61 = vpop.f32.mrb[11].mxu0  ;;  %v333_v62 = vadd.f32 %v332_v59, %v174_v26  ;;  %v334_v63 = vpop.f32.mrb[7].mxu1 }
 0x106   :  { %v442_v32 = vpop.f32.mrb[12].mxu0  ;;  %v339_v0 = vpop.f32.mrb[8].mxu1 }
 0x107   :  { %v443_v36 = vadd.f32 %v442_v32, %v319_v52  ;;  %v444_v2 = vpop.f32.mrb[13].mxu0  ;;  %v340_v5 = vadd.f32 %v339_v0, %v189_v42  ;;  %v341_v7 = vpop.f32.mrb[9].mxu1 }
 0x10a   :  { %v451_v8 = vpop.f32.mrb[14].mxu0  ;;  %v555_v13 = vpop.f32.mrb[10].mxu1 }
 0x10b   :  { %v452_v12 = vadd.f32 %v451_v8, %v326_v35  ;;  %v453_v18 = vpop.f32.mrb[15].mxu0  ;;  %v556_v50 = vadd.f32 %v555_v13, %v434_v46  ;;  %v557_v60 = vpop.f32.mrb[11].mxu1 }
 0x10e   :  { %v460_v30 = vpop.f32.mrb[16].mxu0  ;;  %v566_v34 = vpop.f32.mrb[12].mxu1 }
 0x10f   :  { %v461_v31 = vadd.f32 %v460_v30, %v333_v62  ;;  %v462_v37 = vpop.f32.mrb[17].mxu0  ;;  %v567_v15 = vadd.f32 %v566_v34, %v443_v36  ;;  %v568_v40 = vpop.f32.mrb[13].mxu1 }
 0x112   :  { %v469_v16 = vpop.f32.mrb[18].mxu0  ;;  %v577_v43 = vpop.f32.mrb[14].mxu1 }
 0x113   :  { %v470_v1 = vadd.f32 %v469_v16, %v340_v5  ;;  %v471_v3 = vpop.f32.mrb[19].mxu0  ;;  %v578_v44 = vadd.f32 %v577_v43, %v452_v12  ;;  %v579_v51 = vpop.f32.mrb[15].mxu1 }
 0x116   :  { %v701_v6 = vpop.f32.mrb[20].mxu0  ;;  %v588_v19 = vpop.f32.mrb[16].mxu1 }
 0x117   :  { %v702_v33 = vadd.f32 %v701_v6, %v556_v50  ;;  %v703_v4 = vpop.f32.mrb[21].mxu0  ;;  %v589_v55 = vadd.f32 %v588_v19, %v461_v31  ;;  %v590_v9 = vpop.f32.mrb[17].mxu1 }
 0x11a   :  { %v708_v10 = vpop.f32.mrb[22].mxu0  ;;  %v599_v58 = vpop.f32.mrb[18].mxu1 }
 0x11b   :  { %v709_v17 = vadd.f32 %v708_v10, %v567_v15  ;;  %v710_v11 = vpop.f32.mrb[23].mxu0  ;;  %v600_v21 = vadd.f32 %v599_v58, %v470_v1  ;;  %v601_v27 = vpop.f32.mrb[19].mxu1 }
 0x11e   :  { %v715_v49 = vpop.f32.mrb[24].mxu0  ;;  %v811_v22 = vpop.f32.mrb[20].mxu1 }
 0x11f   :  { %v716_v28 = vadd.f32 %v715_v49, %v578_v44  ;;  %v717_v39 = vpop.f32.mrb[25].mxu0  ;;  %v812_v41 = vadd.f32 %v811_v22, %v702_v33  ;;  %v813_v25 = vpop.f32.mrb[21].mxu1 }
 0x122   :  { %v722_v45 = vpop.f32.mrb[26].mxu0  ;;  %v818_v48 = vpop.f32.mrb[22].mxu1 }
 0x123   :  { %v723_v47 = vadd.f32 %v722_v45, %v589_v55  ;;  %v724_v23 = vpop.f32.mrb[27].mxu0  ;;  %v819_v14 = vadd.f32 %v818_v48, %v709_v17  ;;  %v820_v38 = vpop.f32.mrb[23].mxu1 }
 0x126   :  { %v729_v26 = vpop.f32.mrb[28].mxu0  ;;  %v825_v29 = vpop.f32.mrb[24].mxu1 }
 0x127   :  { %v730_v24 = vadd.f32 %v729_v26, %v600_v21  ;;  %v731_v52 = vpop.f32.mrb[29].mxu0  ;;  %v826_v53 = vadd.f32 %v825_v29, %v716_v28  ;;  %v827_v42 = vpop.f32.mrb[25].mxu1 }
 0x12a   :  { %v929_v20 = vpop.f32.mrb[30].mxu0  ;;  %v832_v54 = vpop.f32.mrb[26].mxu1 }
 0x12b   :  { %v930_v35 = vadd.f32 %v929_v20, %v812_v41  ;;  %v931_v56 = vpop.f32.mrb[31].mxu0  ;;  %v833_v57 = vadd.f32 %v832_v54, %v723_v47  ;;  %v834_v59 = vpop.f32.mrb[27].mxu1 }
 0x12e   :  { %v944_v46 = vpop.f32.mrb[32].mxu0  ;;  %v839_v61 = vpop.f32.mrb[28].mxu1 }
 0x12f   :  { %v945_v62 = vadd.f32 %v944_v46, %v819_v14  ;;  %v946_v63 = vpop.f32.mrb[33].mxu0  ;;  %v840_v32 = vadd.f32 %v839_v61, %v730_v24  ;;  %v841_v0 = vpop.f32.mrb[29].mxu1 }
 0x132   :  { %v959_v36 = vpop.f32.mrb[34].mxu0  ;;  %v1111_v5 = vpop.f32.mrb[30].mxu1 }
 0x133   :  { %v960_v2 = vadd.f32 %v959_v36, %v826_v53  ;;  %v961_v7 = vpop.f32.mrb[35].mxu0  ;;  %v1112_v8 = vadd.f32 %v1111_v5, %v930_v35  ;;  %v1113_v12 = vpop.f32.mrb[31].mxu1 }
 0x136   :  { %v974_v13 = vpop.f32.mrb[36].mxu0  ;;  %v1118_v50 = vpop.f32.mrb[32].mxu1 }
 0x137   :  { %v975_v18 = vadd.f32 %v974_v13, %v833_v57  ;;  %v976_v60 = vpop.f32.mrb[37].mxu0  ;;  %v1119_v30 = vadd.f32 %v1118_v50, %v945_v62  ;;  %v1120_v31 = vpop.f32.mrb[33].mxu1  ;;  %v39_v13 = vld [vmem:[%s2294_s1 + $0x8] sm:$0xff] }
 0x13a   :  { %v989_v34 = vpop.f32.mrb[38].mxu0  ;;  %v1125_v15 = vpop.f32.mrb[34].mxu1 }
 0x13b   :  { %v990_v37 = vadd.f32 %v989_v34, %v840_v32  ;;  %v991_v40 = vpop.f32.mrb[39].mxu0  ;;  %v1126_v16 = vadd.f32 %v1125_v15, %v960_v2  ;;  %v1127_v1 = vpop.f32.mrb[35].mxu1  ;;  %v38_v32 = vld [vmem:[%s2294_s1] sm:$0xff]  ;;  %v40_v15 = vld [vmem:[%s2294_s1 + $0x10] sm:$0xff] }
 0x13e   :  { %v1233_v43 = vpop.f32.mrb[40].mxu0  ;;  %v1132_v3 = vpop.f32.mrb[36].mxu1 }
 0x13f   :  { %v1234_v44 = vadd.f32 %v1233_v43, %v1112_v8  ;;  %v1235_v51 = vpop.f32.mrb[41].mxu0  ;;  %v1133_v6 = vadd.f32 %v1132_v3, %v975_v18  ;;  %v1134_v19 = vpop.f32.mrb[37].mxu1 }
 0x142   :  { %v1242_v33 = vpop.f32.mrb[42].mxu0  ;;  %v1139_v4 = vpop.f32.mrb[38].mxu1 }
 0x143   :  { %v1243_v55 = vadd.f32 %v1242_v33, %v1119_v30  ;;  %v1244_v9 = vpop.f32.mrb[43].mxu0  ;;  %v1140_v10 = vadd.f32 %v1139_v4, %v990_v37  ;;  %v1141_v58 = vpop.f32.mrb[39].mxu1  ;;  %v42_v4 = vld [vmem:[%s2294_s1 + $0x20] sm:$0xff] }
 0x146   :  { %v1251_v17 = vpop.f32.mrb[44].mxu0  ;;  %v1355_v21 = vpop.f32.mrb[40].mxu1 }
 0x147   :  { %v1252_v11 = vadd.f32 %v1251_v17, %v1126_v16  ;;  %v1253_v27 = vpop.f32.mrb[45].mxu0  ;;  %v1356_v49 = vadd.f32 %v1355_v21, %v1234_v44  ;;  %v1357_v28 = vpop.f32.mrb[41].mxu1  ;;  %v41_v44 = vld [vmem:[%s2294_s1 + $0x18] sm:$0xff] }
 0x14a   :  { %v1260_v22 = vpop.f32.mrb[46].mxu0  ;;  %v1366_v41 = vpop.f32.mrb[42].mxu1 }
 0x14b   :  { %v1261_v39 = vadd.f32 %v1260_v22, %v1133_v6  ;;  %v1262_v25 = vpop.f32.mrb[47].mxu0  ;;  %v1367_v45 = vadd.f32 %v1366_v41, %v1243_v55  ;;  %v1368_v47 = vpop.f32.mrb[43].mxu1 }
 0x14e   :  { %v1269_v48 = vpop.f32.mrb[48].mxu0  ;;  %v1377_v14 = vpop.f32.mrb[44].mxu1 }
 0x14f   :  { %v1270_v23 = vadd.f32 %v1269_v48, %v1140_v10  ;;  %v1271_v38 = vpop.f32.mrb[49].mxu0  ;;  %v1378_v26 = vadd.f32 %v1377_v14, %v1252_v11  ;;  %v1379_v24 = vpop.f32.mrb[45].mxu1 }
 0x152   :  { %v1501_v29 = vpop.f32.mrb[50].mxu0  ;;  %v1388_v52 = vpop.f32.mrb[46].mxu1 }
 0x153   :  { %v1502_v53 = vadd.f32 %v1501_v29, %v1356_v49  ;;  %v1503_v42 = vpop.f32.mrb[51].mxu0  ;;  %v1389_v20 = vadd.f32 %v1388_v52, %v1261_v39  ;;  %v1390_v54 = vpop.f32.mrb[47].mxu1 }
 0x156   :  { %v1508_v35 = vpop.f32.mrb[52].mxu0  ;;  %v1399_v56 = vpop.f32.mrb[48].mxu1 }
 0x157   :  { %v1509_v57 = vadd.f32 %v1508_v35, %v1367_v45  ;;  %v1510_v59 = vpop.f32.mrb[53].mxu0  ;;  %v1400_v46 = vadd.f32 %v1399_v56, %v1270_v23  ;;  %v1401_v61 = vpop.f32.mrb[49].mxu1 }
 0x15a   :  { %v1515_v62 = vpop.f32.mrb[54].mxu0  ;;  %v1611_v0 = vpop.f32.mrb[50].mxu1 }
 0x15b   :  { %v1516_v63 = vadd.f32 %v1515_v62, %v1378_v26  ;;  %v1517_v36 = vpop.f32.mrb[55].mxu0  ;;  %v1612_v2 = vadd.f32 %v1611_v0, %v1502_v53  ;;  %v1613_v5 = vpop.f32.mrb[51].mxu1 }
 0x15d   :  { %v1643_v7 = vadd.f32 %v1612_v2, %v38_v32 }
 0x15e   :  { %v1522_v8 = vpop.f32.mrb[56].mxu0  ;;  %v1618_v18 = vpop.f32.mrb[52].mxu1 }
 0x15f   :  { %v1523_v12 = vadd.f32 %v1522_v8, %v1389_v20  ;;  %v1524_v50 = vpop.f32.mrb[57].mxu0  ;;  %1649 = vst.msk [vmem:[%s2294_s1] sm:$0xff] %vm12_vm0, %v1643_v7  ;;  %v1619_v60 = vadd.f32 %v1618_v18, %v1509_v57  ;;  %v1620_v30 = vpop.f32.mrb[53].mxu1 }
 0x161   :  { %v1644_v31 = vadd.f32 %v1619_v60, %v39_v13 }
 0x162   :  { %v1529_v34 = vpop.f32.mrb[58].mxu0  ;;  %v1625_v40 = vpop.f32.mrb[54].mxu1 }
 0x163   :  { %v1530_v37 = vadd.f32 %v1529_v34, %v1400_v46  ;;  %v1531_v16 = vpop.f32.mrb[59].mxu0  ;;  %1650 = vst.msk [vmem:[%s2294_s1 + $0x8] sm:$0xff] %vm12_vm0, %v1644_v31  ;;  %v1626_v1 = vadd.f32 %v1625_v40, %v1516_v63  ;;  %v1627_v43 = vpop.f32.mrb[55].mxu1 }
 0x165   :  { %v1645_v3 = vadd.f32 %v1626_v1, %v40_v15 }
 0x166   :  { %v1632_v51 = vpop.f32.mrb[56].mxu1 }
 0x167   :  { %1651 = vst.msk [vmem:[%s2294_s1 + $0x10] sm:$0xff] %vm12_vm0, %v1645_v3  ;;  %v1633_v6 = vadd.f32 %v1632_v51, %v1523_v12  ;;  %v1634_v19 = vpop.f32.mrb[57].mxu1 }
 0x169   :  { %v1646_v33 = vadd.f32 %v1633_v6, %v41_v44 }
 0x16a   :  { %v1639_v55 = vpop.f32.mrb[58].mxu1 }
 0x16b   :  { %1652 = vst.msk [vmem:[%s2294_s1 + $0x18] sm:$0xff] %vm12_vm0, %v1646_v33  ;;  %v1640_v9 = vadd.f32 %v1639_v55, %v1530_v37  ;;  %v1641_v10 = vpop.f32.mrb[59].mxu1 }
 0x16d   :  { %v1647_v58 = vadd.f32 %v1640_v9, %v42_v4 }
 0x16f   :  { %1653 = vst.msk [vmem:[%s2294_s1 + $0x20] sm:$0xff] %vm12_vm0, %v1647_v58 }

// kernel: _forward.3
= control target key start
LH: loop header
LB: loop body
LE: loop exit
PB: predicated region body
PF: predicated region fallthrough
CT: control target
= control target key end

     0   :  { %v1425_v3 = vmov 0.0   ;;  %vm33_vm0 = vcmask 326656   ;;  %s1849_s1 = inlined_call_operand.vmem [shape: f32[40,512], index: 1, kind: input, shape index: {}]   ;;  %s1850_s0 = inlined_call_operand.vmem [shape: f32[16,40], index: 0, kind: input, shape index: {}]   ;;  %s1851_s2 = inlined_call_operand.vmem [shape: f32[16,512], index: 2, kind: output, shape index: {}]  }
   0x1   :  { %v14_v0 = vld [vmem:[%s1849_s1 + $0x8] sm:$0xff]  ;;  %v16_v2 = vld [vmem:[%s1849_s1 + $0x18] sm:$0xff]  ;;  %114 = vmatprep.mubr.f32.mxu0 %v1425_v3  ;;  %732 = vmatprep.mubr.f32.mxu1 %v1425_v3  ;;  %v13_v8 = vld [vmem:[%s1849_s1] sm:$0xff] }
   0x2   :  { %v18_v1 = vld [vmem:[%s1849_s1 + $0x28] sm:$0xff]  ;;  %v40_v4 = vand.u32 4294901760, %v14_v0  ;;  %v20_v6 = vld [vmem:[%s1849_s1 + $0x38] sm:$0xff]  ;;  %v658_v7 = vand.u32 4294901760, %v16_v2  ;;  %v17_v9 = vld [vmem:[%s1849_s1 + $0x20] sm:$0xff]  ;;  %v42_v11 = vand.u32 4294901760, %v13_v8 }
   0x3   :  { %v44_v5 = vand.u32 4294901760, %v18_v1  ;;  %v662_v10 = vand.u32 4294901760, %v20_v6  ;;  %v46_v12 = vand.u32 4294901760, %v17_v9  ;;  %v15_v13 = vld [vmem:[%s1849_s1 + $0x10] sm:$0xff]  ;;  %v22_v15 = vld [vmem:[%s1849_s1 + $0x48] sm:$0xff]  ;;  %v24_v21 = vld [vmem:[%s1849_s1 + $0x58] sm:$0xff] }
   0x4   :  { %v19_v14 = vld [vmem:[%s1849_s1 + $0x30] sm:$0xff]  ;;  %v1472_v17 = vsub.f32 %v14_v0, %v40_v4  ;;  %v1476_v19 = vsub.f32 %v16_v2, %v658_v7  ;;  %v26_v20 = vld [vmem:[%s1849_s1 + $0x68] sm:$0xff]  ;;  %v28_v22 = vld [vmem:[%s1849_s1 + $0x78] sm:$0xff]  ;;  %v1493_v26 = vsub.f32 %v13_v8, %v42_v11  ;;  %v660_v29 = vand.u32 4294901760, %v15_v13 }
   0x5   :  { %v1470_v16 = vpack.c.bf16 %v44_v5, %v40_v4  ;;  %v1474_v18 = vsub.f32 %v18_v1, %v44_v5  ;;  %v1487_v23 = vpack.c.bf16 %v662_v10, %v658_v7  ;;  %v1489_v24 = vsub.f32 %v20_v6, %v662_v10  ;;  %v21_v27 = vld [vmem:[%s1849_s1 + $0x40] sm:$0xff]  ;;  %v23_v37 = vld [vmem:[%s1849_s1 + $0x50] sm:$0xff]  ;;  %v1523_v43 = vld [vmem:[%s1849_s1 + $0x88] sm:$0xff] }
   0x6   :  { %v1491_v25 = vpack.c.bf16 %v46_v12, %v42_v11  ;;  %v1499_v28 = vsub.f32 %v17_v9, %v46_v12  ;;  %v664_v30 = vand.u32 4294901760, %v19_v14  ;;  %v48_v31 = vand.u32 4294901760, %v22_v15  ;;  %v25_v32 = vld [vmem:[%s1849_s1 + $0x60] sm:$0xff]  ;;  %v27_v38 = vld [vmem:[%s1849_s1 + $0x70] sm:$0xff]  ;;  %v1528_v44 = vld [vmem:[%s1849_s1 + $0x98] sm:$0xff] }
   0x7   :  { %1289 = vmatprep.subr.bf16.mxu0 %v1470_v16  ;;  %1337 = vmatprep.subr.bf16.mxu1 %v1487_v23  ;;  %v52_v33 = vand.u32 4294901760, %v26_v20  ;;  %v666_v34 = vand.u32 4294901760, %v24_v21  ;;  %v670_v35 = vand.u32 4294901760, %v28_v22  ;;  %v50_v36 = vand.u32 4294901760, %v21_v27  ;;  %v29_v45 = vld [vmem:[%s1849_s1 + $0x80] sm:$0xff]  ;;  %v31_v50 = vld [vmem:[%s1849_s1 + $0x90] sm:$0xff] }
   0x8   :  { %1291 = vmatpush1.bf16.msra.mxu0 %v1491_v25  ;;  %v1512_v39 = vpack.c.bf16 %v664_v30, %v660_v29  ;;  %v1514_v40 = vsub.f32 %v15_v13, %v660_v29  ;;  %v1516_v41 = vsub.f32 %v19_v14, %v664_v30  ;;  %v1518_v42 = vsub.f32 %v22_v15, %v48_v31  ;;  %v11_v63 = vld [vmem:[%s1850_s0] sm:$0xff] }
   0x9   :  { %v1533_v46 = vpack.c.bf16 %v52_v33, %v48_v31  ;;  %v1535_v47 = vsub.f32 %v26_v20, %v52_v33  ;;  %v1537_v48 = vpack.c.bf16 %v670_v35, %v666_v34  ;;  %v1539_v49 = vsub.f32 %v24_v21, %v666_v34 }
   0xa   :  { %1339 = vmatpush1.bf16.msra.mxu1 %v1512_v39  ;;  %v1545_v51 = vsub.f32 %v28_v22, %v670_v35  ;;  %v54_v52 = vand.u32 4294901760, %v25_v32  ;;  %v1547_v53 = vsub.f32 %v21_v27, %v50_v36  ;;  %v668_v54 = vand.u32 4294901760, %v23_v37 }
   0xb   :  { %1293 = vmatprep.subr.bf16.mxu0 %v1533_v46  ;;  %1341 = vmatprep.subr.bf16.mxu1 %v1537_v48  ;;  %v672_v55 = vand.u32 4294901760, %v27_v38  ;;  %v1552_v56 = vand.u32 4294901760, %v1523_v43  ;;  %v1555_v57 = vand.u32 4294901760, %v1528_v44  ;;  %v1557_v58 = vand.u32 4294901760, %v29_v45 }
   0xc   :  { %v1559_v59 = vpack.c.bf16 %v54_v52, %v50_v36  ;;  %v1561_v60 = vsub.f32 %v25_v32, %v54_v52  ;;  %v1563_v61 = vsub.f32 %v23_v37, %v668_v54  ;;  %v1565_v62 = vand.u32 4294901760, %v31_v50 }
   0xd   :  { %v1570_v0 = vpack.c.bf16 %v672_v55, %v668_v54  ;;  %v1572_v1 = vsub.f32 %v27_v38, %v672_v55  ;;  %v1575_v2 = vsub.f32 %v29_v45, %v1557_v58  ;;  %v139_v4 = vand.u32 4294901760, %v1472_v17 }
   0xe   :  { %1295 = vmatpush1.bf16.msra.mxu0 %v1559_v59  ;;  %v1580_v5 = vsub.f32 %v31_v50, %v1565_v62  ;;  %v151_v6 = vand.u32 4294901760, %v1474_v18  ;;  %v757_v7 = vand.u32 4294901760, %v1476_v19  ;;  %v769_v8 = vand.u32 4294901760, %v1489_v24 }
   0xf   :  { %1343 = vmatpush1.bf16.msra.mxu1 %v1570_v0  ;;  %57 = vmatprep.subr.mxu0 %v1552_v56  ;;  %v140_v9 = vsub.f32 %v1472_v17, %v139_v4  ;;  %v35_v10 = vsel %vm33_vm0, %v11_v63, 0  ;;  %v145_v11 = vand.u32 4294901760, %v1493_v26  ;;  %v157_v12 = vand.u32 4294901760, %v1499_v28 }
  0x10   :  { %675 = vmatprep.subr.mxu1 %v1555_v57  ;;  %v152_v13 = vsub.f32 %v1474_v18, %v151_v6  ;;  %v758_v14 = vsub.f32 %v1476_v19, %v757_v7  ;;  %v770_v15 = vsub.f32 %v1489_v24, %v769_v8  ;;  %v1603_v20 = vand.u32 4294901760, %v35_v10 }
  0x11   :  { %v141_v21 = vand.u32 4294901760, %v140_v9  ;;  %v146_v22 = vsub.f32 %v1493_v26, %v145_v11  ;;  %v158_v27 = vsub.f32 %v1499_v28, %v157_v12  ;;  %v763_v29 = vand.u32 4294901760, %v1514_v40 }
  0x12   :  { %59 = vmatpush1.msra.mxu0 %v1557_v58  ;;  %v153_v30 = vand.u32 4294901760, %v152_v13  ;;  %v759_v31 = vand.u32 4294901760, %v758_v14  ;;  %v771_v32 = vand.u32 4294901760, %v770_v15  ;;  %v1614_v33 = vsub.f32 %v35_v10, %v1603_v20 }
  0x13   :  { %677 = vmatpush1.msra.mxu1 %v1565_v62  ;;  %v147_v34 = vand.u32 4294901760, %v146_v22  ;;  %v159_v35 = vand.u32 4294901760, %v158_v27  ;;  %v764_v36 = vsub.f32 %v1514_v40, %v763_v29  ;;  %v775_v37 = vand.u32 4294901760, %v1516_v41 }
  0x14   :  { %v1296_v38 = vpack.c.bf16 %v153_v30, %v141_v21  ;;  %v1344_v45 = vpack.c.bf16 %v771_v32, %v759_v31  ;;  %v1622_v50 = vand.u32 4294901760, %v1614_v33  ;;  %v1855_v52 = vand.u32 4294901760, %v1518_v42 }
  0x15   :  { %v1298_v54 = vpack.c.bf16 %v159_v35, %v147_v34  ;;  %v765_v55 = vand.u32 4294901760, %v764_v36  ;;  %v776_v63 = vsub.f32 %v1516_v41, %v775_v37  ;;  %v1854_v9 = vand.u32 4294901760, %v1535_v47  ;;  %v12_v36 = vld [vmem:[%s1850_s0 + $0x8] sm:$0xff] }
  0x16   :  { %1297 = vmatprep.subr.bf16.mxu0 %v1296_v38  ;;  %1345 = vmatprep.subr.bf16.mxu1 %v1344_v45  ;;  %v118_v10 = vsub.f32 %v1614_v33, %v1622_v50  ;;  %v164_v13 = vsub.f32 %v1518_v42, %v1855_v52  ;;  %v1852_v14 = vand.u32 4294901760, %v1539_v49  ;;  %v1853_v15 = vand.u32 4294901760, %v1545_v51 }
  0x17   :  { %v777_v21 = vand.u32 4294901760, %v776_v63  ;;  %v176_v22 = vsub.f32 %v1535_v47, %v1854_v9  ;;  %v1856_v27 = vand.u32 4294901760, %v1547_v53  ;;  %v1857_v30 = vand.u32 4294901760, %v1561_v60 }
  0x18   :  { %v119_v31 = vand.u32 4294901760, %v118_v10  ;;  %v165_v32 = vand.u32 4294901760, %v164_v13  ;;  %v782_v34 = vsub.f32 %v1539_v49, %v1852_v14  ;;  %v794_v35 = vsub.f32 %v1545_v51, %v1853_v15 }
  0x19   :  { %v1346_v38 = vpack.c.bf16 %v777_v21, %v765_v55  ;;  %v177_v45 = vand.u32 4294901760, %v176_v22  ;;  %v170_v63 = vsub.f32 %v1547_v53, %v1856_v27  ;;  %v182_v10 = vsub.f32 %v1561_v60, %v1857_v30 }
  0x1a   :  { %120 = vmatmul.mubr.f32.vlgmr.msra.gmra.mrb[0].mxu0 %v119_v31  ;;  %738 = vmatmul.mubr.f32.vlgmr.msra.gmra.mrb[0].mxu1 %v119_v31  ;;  %v783_v13 = vand.u32 4294901760, %v782_v34  ;;  %v795_v14 = vand.u32 4294901760, %v794_v35  ;;  %v787_v15 = vand.u32 4294901760, %v1563_v61  ;;  %v799_v9 = vand.u32 4294901760, %v1572_v1 }
  0x1b   :  { %1299 = vmatpush1.bf16.msra.mxu0 %v1298_v54  ;;  %1347 = vmatpush1.bf16.msra.mxu1 %v1346_v38  ;;  %v1300_v55 = vpack.c.bf16 %v177_v45, %v165_v32  ;;  %v171_v21 = vand.u32 4294901760, %v170_v63  ;;  %v183_v22 = vand.u32 4294901760, %v182_v10  ;;  %v38_v52 = vsel %vm33_vm0, %v12_v36, 0 }
  0x1c   :  { %v1348_v27 = vpack.c.bf16 %v795_v14, %v783_v13  ;;  %v788_v30 = vsub.f32 %v1563_v61, %v787_v15  ;;  %v800_v31 = vsub.f32 %v1572_v1, %v799_v9  ;;  %125 = vmatprep.mubr.f32.mxu0 %v1425_v3  ;;  %743 = vmatprep.mubr.f32.mxu1 %v1425_v3  ;;  %v1667_v54 = vand.u32 4294901760, %v38_v52 }
  0x1d   :  { %1301 = vmatprep.subr.bf16.mxu0 %v1300_v55  ;;  %v1302_v32 = vpack.c.bf16 %v183_v22, %v171_v21  ;;  %v1671_v34 = vsub.f32 %v1523_v43, %v1552_v56  ;;  %v1675_v14 = vsub.f32 %v1528_v44, %v1555_v57  ;;  %v1859_v35 = vand.u32 4294901760, %v1575_v2 }
  0x1e   :  { %1349 = vmatprep.subr.bf16.mxu1 %v1348_v27  ;;  %v789_v36 = vand.u32 4294901760, %v788_v30  ;;  %v801_v38 = vand.u32 4294901760, %v800_v31  ;;  %v1679_v45 = vsub.f32 %v38_v52, %v1667_v54  ;;  %v1858_v63 = vand.u32 4294901760, %v1580_v5 }
  0x1f   :  { %1303 = vmatpush1.bf16.msra.mxu0 %v1302_v32  ;;  %v187_v10 = vand.u32 4294901760, %v1671_v34  ;;  %v805_v43 = vand.u32 4294901760, %v1675_v14  ;;  %v194_v44 = vsub.f32 %v1575_v2, %v1859_v35  ;;  %v1352_v35 = vpack.c.bf16 %v1489_v24, %v1476_v19 }
  0x20   :  { %v1350_v13 = vpack.c.bf16 %v801_v38, %v789_v36  ;;  %v1688_v55 = vand.u32 4294901760, %v1679_v45  ;;  %v812_v52 = vsub.f32 %v1580_v5, %v1858_v63  ;;  %v1304_v63 = vpack.c.bf16 %v1474_v18, %v1472_v17 }
  0x21   :  { %v188_v27 = vsub.f32 %v1671_v34, %v187_v10  ;;  %v806_v30 = vsub.f32 %v1675_v14, %v805_v43  ;;  %v195_v32 = vand.u32 4294901760, %v194_v44  ;;  %v1354_v44 = vpack.c.bf16 %v1516_v41, %v1514_v40 }
  0x22   :  { %1351 = vmatpush1.bf16.msra.mxu1 %v1350_v13  ;;  %v129_v21 = vsub.f32 %v1679_v45, %v1688_v55  ;;  %v813_v36 = vand.u32 4294901760, %v812_v52  ;;  %v1306_v13 = vpack.c.bf16 %v1499_v28, %v1493_v26  ;;  %v1308_v52 = vpack.c.bf16 %v1535_v47, %v1518_v42 }
  0x23   :  { %v189_v22 = vand.u32 4294901760, %v188_v27  ;;  %v807_v31 = vand.u32 4294901760, %v806_v30  ;;  %v1356_v27 = vpack.c.bf16 %v1545_v51, %v1539_v49  ;;  %v1310_v30 = vpack.c.bf16 %v1561_v60, %v1547_v53 }
  0x24   :  { %v130_v38 = vand.u32 4294901760, %v129_v21  ;;  %v1370_v17 = vpack.c.bf16 %v775_v37, %v763_v29  ;;  %v1860_v18 = vand.u32 4294901760, %v1518_v42  ;;  %v1861_v19 = vand.u32 4294901760, %v1535_v47 }
  0x25   :  { %190 = vmatprep.subr.mxu0 %v189_v22  ;;  %808 = vmatprep.subr.mxu1 %v807_v31  ;;  %v1863_v26 = vand.u32 4294901760, %v1545_v51  ;;  %v1864_v40 = vand.u32 4294901760, %v1547_v53  ;;  %v1865_v41 = vand.u32 4294901760, %v1561_v60  ;;  %v1374_v47 = vpack.c.bf16 %v799_v9, %v787_v15 }
  0x26   :  { %131 = vmatmul.mubr.f32.gmra.mrb[2].mxu0 %v130_v38  ;;  %749 = vmatmul.mubr.f32.gmra.mrb[2].mxu1 %v130_v38  ;;  %v1324_v24 = vpack.c.bf16 %v1861_v19, %v1860_v18  ;;  %v1867_v51 = vand.u32 4294901760, %v1580_v5 }
  0x27   :  { %196 = vmatpush1.msra.mxu0 %v195_v32  ;;  %814 = vmatpush1.msra.mxu1 %v813_v36  ;;  %v1326_v42 = vpack.c.bf16 %v1865_v41, %v1864_v40 }
  0x28   :  { %251 = vmatprep.mubr.f32.mxu0 %v1425_v3  ;;  %1305 = vmatprep.subr.bf16.mxu0 %v1304_v63  ;;  %v1358_v63 = vpack.c.bf16 %v1572_v1, %v1563_v61 }
  0x29   :  { %869 = vmatprep.mubr.f32.mxu1 %v1425_v3  ;;  %1353 = vmatprep.subr.bf16.mxu1 %v1352_v35  ;;  %v1368_v35 = vpack.c.bf16 %v769_v8, %v757_v7 }
  0x2a   :  { %253 = vmatmul.mubr.f32.vlgmr.msra.gmra.mrb[0].mxu0 %v1603_v20  ;;  %871 = vmatmul.mubr.f32.vlgmr.msra.gmra.mrb[0].mxu1 %v1603_v20 }
  0x2b   :  { %1307 = vmatpush1.bf16.msra.mxu0 %v1306_v13  ;;  %1355 = vmatpush1.bf16.msra.mxu1 %v1354_v44 }
  0x2c   :  { %1309 = vmatprep.subr.bf16.mxu0 %v1308_v52  ;;  %1357 = vmatprep.subr.bf16.mxu1 %v1356_v27 }
  0x2d   :  { %258 = vmatprep.mubr.f32.mxu0 %v1425_v3  ;;  %876 = vmatprep.mubr.f32.mxu1 %v1425_v3 }
  0x2e   :  { %260 = vmatmul.mubr.f32.gmra.mrb[2].mxu0 %v1667_v54  ;;  %878 = vmatmul.mubr.f32.gmra.mrb[2].mxu1 %v1667_v54 }
  0x2f   :  { %1311 = vmatpush1.bf16.msra.mxu0 %v1310_v30  ;;  %1359 = vmatpush1.bf16.msra.mxu1 %v1358_v63 }
  0x30   :  { %292 = vmatprep.subr.mxu0 %v1671_v34  ;;  %910 = vmatprep.subr.mxu1 %v1675_v14 }
  0x31   :  { %350 = vmatprep.mubr.f32.mxu0 %v1425_v3  ;;  %968 = vmatprep.mubr.f32.mxu1 %v1425_v3 }
  0x33   :  { %295 = vmatpush1.msra.mxu0 %v1575_v2  ;;  %913 = vmatpush1.msra.mxu1 %v1580_v5 }
  0x34   :  { %1313 = vmatprep.subr.bf16.mxu0 %v1470_v16  ;;  %1361 = vmatprep.subr.bf16.mxu1 %v1487_v23 }
  0x35   :  { %353 = vmatmul.mubr.f32.vlgmr.msra.gmra.mrb[0].mxu0 %v1614_v33  ;;  %971 = vmatmul.mubr.f32.vlgmr.msra.gmra.mrb[0].mxu1 %v1614_v33  ;;  %v1320_v33 = vpack.c.bf16 %v151_v6, %v139_v4  ;;  %v1862_v4 = vand.u32 4294901760, %v1539_v49  ;;  %v1866_v49 = vand.u32 4294901760, %v1575_v2 }
  0x36   :  { %1315 = vmatpush1.bf16.msra.mxu0 %v1491_v25  ;;  %1363 = vmatpush1.bf16.msra.mxu1 %v1512_v39 }
  0x37   :  { %1317 = vmatprep.subr.bf16.mxu0 %v1533_v46  ;;  %1365 = vmatprep.subr.bf16.mxu1 %v1537_v48  ;;  %v1372_v28 = vpack.c.bf16 %v1863_v26, %v1862_v4 }
  0x38   :  { %358 = vmatprep.mubr.f32.mxu0 %v1425_v3  ;;  %976 = vmatprep.mubr.f32.mxu1 %v1425_v3 }
  0x39   :  { %361 = vmatmul.mubr.f32.gmra.mrb[2].mxu0 %v1679_v45  ;;  %979 = vmatmul.mubr.f32.gmra.mrb[2].mxu1 %v1679_v45  ;;  %v1322_v45 = vpack.c.bf16 %v157_v12, %v145_v11 }
  0x3a   :  { %1319 = vmatpush1.bf16.msra.mxu0 %v1559_v59  ;;  %1367 = vmatpush1.bf16.msra.mxu1 %v1570_v0 }
  0x3b   :  { %384 = vmatprep.subr.mxu0 %v1552_v56  ;;  %1002 = vmatprep.subr.mxu1 %v1555_v57 }
  0x3c   :  { %441 = vmatprep.mubr.f32.mxu0 %v1425_v3  ;;  %1059 = vmatprep.mubr.f32.mxu1 %v1425_v3 }
  0x3e   :  { %386 = vmatpush1.msra.mxu0 %v1557_v58  ;;  %1004 = vmatpush1.msra.mxu1 %v1565_v62 }
  0x3f   :  { %1321 = vmatprep.subr.bf16.mxu0 %v1320_v33  ;;  %1369 = vmatprep.subr.bf16.mxu1 %v1368_v35 }
  0x40   :  { %445 = vmatmul.mubr.f32.vlgmr.msra.gmra.mrb[0].mxu0 %v1622_v50  ;;  %1063 = vmatmul.mubr.f32.vlgmr.msra.gmra.mrb[0].mxu1 %v1622_v50 }
  0x41   :  { %1323 = vmatpush1.bf16.msra.mxu0 %v1322_v45  ;;  %1371 = vmatpush1.bf16.msra.mxu1 %v1370_v17 }
  0x42   :  { %1325 = vmatprep.subr.bf16.mxu0 %v1324_v24  ;;  %1373 = vmatprep.subr.bf16.mxu1 %v1372_v28 }
  0x43   :  { %450 = vmatprep.mubr.f32.mxu0 %v1425_v3  ;;  %1068 = vmatprep.mubr.f32.mxu1 %v1425_v3 }
  0x44   :  { %454 = vmatmul.mubr.f32.gmra.mrb[2].mxu0 %v1688_v55  ;;  %1072 = vmatmul.mubr.f32.gmra.mrb[2].mxu1 %v1688_v55 }
  0x45   :  { %1327 = vmatpush1.bf16.msra.mxu0 %v1326_v42  ;;  %1375 = vmatpush1.bf16.msra.mxu1 %v1374_v47 }
  0x46   :  { %495 = vmatprep.subr.mxu0 %v187_v10  ;;  %1113 = vmatprep.subr.mxu1 %v805_v43 }
  0x47   :  { %554 = vmatprep.mubr.f32.mxu0 %v1425_v3  ;;  %1172 = vmatprep.mubr.f32.mxu1 %v1425_v3 }
  0x49   :  { %499 = vmatpush1.msra.mxu0 %v1866_v49  ;;  %1117 = vmatpush1.msra.mxu1 %v1867_v51 }
  0x4a   :  { %1329 = vmatprep.subr.bf16.mxu0 %v1470_v16  ;;  %1377 = vmatprep.subr.bf16.mxu1 %v1487_v23 }
  0x4b   :  { %556 = vmatmul.mubr.f32.vlgmr.msra.gmra.mrb[0].mxu0 %v1603_v20  ;;  %1174 = vmatmul.mubr.f32.vlgmr.msra.gmra.mrb[0].mxu1 %v1603_v20 }
  0x4c   :  { %1331 = vmatpush1.bf16.msra.mxu0 %v1491_v25  ;;  %1379 = vmatpush1.bf16.msra.mxu1 %v1512_v39 }
  0x4d   :  { %1333 = vmatprep.subr.bf16.mxu0 %v1533_v46  ;;  %1381 = vmatprep.subr.bf16.mxu1 %v1537_v48 }
  0x4e   :  { %561 = vmatprep.mubr.f32.mxu0 %v1425_v3  ;;  %1179 = vmatprep.mubr.f32.mxu1 %v1425_v3 }
  0x4f   :  { %563 = vmatmul.mubr.f32.gmra.mrb[2].mxu0 %v1667_v54  ;;  %1181 = vmatmul.mubr.f32.gmra.mrb[2].mxu1 %v1667_v54 }
  0x50   :  { %1335 = vmatpush1.bf16.msra.mxu0 %v1559_v59  ;;  %1383 = vmatpush1.bf16.msra.mxu1 %v1570_v0 }
  0x51   :  { %586 = vmatprep.subr.mxu0 %v1552_v56  ;;  %1204 = vmatprep.subr.mxu1 %v1555_v57 }
  0x52   :  { %643 = vmatprep.mubr.f32.mxu0 %v1425_v3  ;;  %1261 = vmatprep.mubr.f32.mxu1 %v1425_v3 }
  0x54   :  { %588 = vmatpush1.msra.mxu0 %v1557_v58  ;;  %1206 = vmatpush1.msra.mxu1 %v1565_v62 }
  0x55   :  { %645 = vmatmul.mubr.f32.vlgmr.msra.gmra.mrb[0].mxu0 %v1603_v20  ;;  %1263 = vmatmul.mubr.f32.vlgmr.msra.gmra.mrb[0].mxu1 %v1603_v20 }
  0x56   :  { %650 = vmatprep.mubr.f32.mxu0 %v1425_v3  ;;  %1268 = vmatprep.mubr.f32.mxu1 %v1425_v3 }
  0x59   :  { %652 = vmatmul.mubr.f32.gmra.mrb[2].mxu0 %v1667_v54  ;;  %1270 = vmatmul.mubr.f32.gmra.mrb[2].mxu1 %v1667_v54 }
 0x128   :  { %v646_v16 = vpop.f32.mrb[0].mxu0  ;;  %v1264_v23 = vpop.f32.mrb[0].mxu1 }
 0x129   :  { %1276 = vst [vmem:[%s1851_s2] sm:$0xff] %v646_v16  ;;  %1278 = vst [vmem:[%s1851_s2 + $0x10] sm:$0xff] %v1264_v23  ;;  %v648_v25 = vpop.f32.mrb[1].mxu0  ;;  %v1266_v39 = vpop.f32.mrb[1].mxu1 }
 0x12a   :  { %1277 = vst [vmem:[%s1851_s2 + $0x8] sm:$0xff] %v648_v25  ;;  %1279 = vst [vmem:[%s1851_s2 + $0x18] sm:$0xff] %v1266_v39 }
 0x12c   :  { %v653_v3 = vpop.f32.mrb[2].mxu0  ;;  %v1271_v46 = vpop.f32.mrb[2].mxu1 }
 0x12d   :  { %1280 = vst [vmem:[%s1851_s2 + $0x20] sm:$0xff] %v653_v3  ;;  %1282 = vst [vmem:[%s1851_s2 + $0x30] sm:$0xff] %v1271_v46  ;;  %v655_v48 = vpop.f32.mrb[3].mxu0  ;;  %v1273_v53 = vpop.f32.mrb[3].mxu1 }
 0x12e   :  { %1281 = vst [vmem:[%s1851_s2 + $0x28] sm:$0xff] %v655_v48  ;;  %1283 = vst [vmem:[%s1851_s2 + $0x38] sm:$0xff] %v1273_v53 }

</bundles_post_ra>
